<compile_context>
chip_gen: v7x
topology: tpu7x:2x2x1
jax: 0.10.0
libtpu: 0.0.40
codegen_flags: <defaults>
</compile_context>

<pallas_src>
import jax
import jax.numpy as jnp
from jax.experimental import pallas as pl
from jax.experimental.pallas import tpu as pltpu

# ----------------------------- configuration --------------------------------
M = 2            # batch
N = 16           # tokens (self-attention: nq == nkv == N)
DZ = 32          # embed_dim (qk_dim == v_dim)
DX = 2           # location dimensionality
NUM_HEADS = 2
HEAD_DIM = 16
INNER = NUM_HEADS * HEAD_DIM          # 32
KH = 16                               # hidden width of the TE-kernel MLP
SCALE = HEAD_DIM ** (-0.5)
NEG = -1e30                           # stand-in for -inf in masked_fill

# offsets inside the packed SMEM parameter slab (f32 scalars)
_OFF_W1 = 0                          # w1[d, j] at _OFF_W1 + d*KH + j       (DX*KH)
_OFF_B1 = _OFF_W1 + DX * KH          # b1[j]    at _OFF_B1 + j              (KH)
_OFF_W2 = _OFF_B1 + KH               # w2[j, h] at _OFF_W2 + j*NUM_HEADS + h
_OFF_B2 = _OFF_W2 + KH * NUM_HEADS   # b2[h]    at _OFF_B2 + h


# ------------------------------- the kernel ---------------------------------
def te_self_attn_kernel(
    z_ref,       # (M*N, DZ)       tokens, VMEM
    x_ref,       # (DX, M, N)      locations, coordinate-major, VMEM
    amask_ref,   # (M, N, N)       additive mask (0 attend / NEG masked), VMEM
    wqkv_ref,    # (DZ, 3*INNER)   fused [wq*SCALE | wk | wv], VMEM
    wob_ref,     # (INNER+1, DZ)   [wo ; bo] stacked, VMEM
    sm_ref,      # (82,)           packed w1/b1/w2/b2 scalars, SMEM
    o_ref,       # (M*N, DZ)       output, VMEM
):
    f32, bf16 = jnp.float32, jnp.bfloat16

    # ---- fused, pre-scaled q/k/v projection over all M*N tokens (one MXU matmul) ----
    qkv = jnp.dot(z_ref[...].astype(bf16), wqkv_ref[...].astype(bf16),
                  preferred_element_type=f32).reshape(M, N, 3 * INNER)

    # ---- TE bias: contract KH immediately (no (M,N,N,KH) intermediate, no spill) ----
    x0 = x_ref[0]                 # (M, N)  location coordinate 0
    x1 = x_ref[1]                 # (M, N)  location coordinate 1
    amask = amask_ref[...]        # (M, N, N)
    # per-head f32 bias accumulators with mask and b2 folded in up front
    biases = [amask + sm_ref[_OFF_B2 + h] for h in range(NUM_HEADS)]
    for j in range(KH):
        # a_j[m, i] = sum_d x[m, i, d] * w1[d, j]   (two VPU FMAs, no K=2 MXU matmul)
        a_j = x0 * sm_ref[_OFF_W1 + j] + x1 * sm_ref[_OFF_W1 + KH + j]        # (M, N)
        # relu(a_q - a_k + b1[j]) over all (q, k) pairs, then FMA into each head's bias
        d_j = (a_j + sm_ref[_OFF_B1 + j])[:, :, None] - a_j[:, None, :]       # (M, N, N)
        h_j = jnp.maximum(d_j, 0.0)
        for h in range(NUM_HEADS):
            biases[h] = biases[h] + h_j * sm_ref[_OFF_W2 + j * NUM_HEADS + h]

    # ---- attention per head; head-concat folded into the output projection ----
    out = jnp.broadcast_to(wob_ref[INNER:INNER + 1, :], (M * N, DZ))          # start from bo
    for h in range(NUM_HEADS):
        q_h = qkv[:, :, h * HEAD_DIM:(h + 1) * HEAD_DIM].astype(bf16)
        k_h = qkv[:, :, INNER + h * HEAD_DIM: INNER + (h + 1) * HEAD_DIM].astype(bf16)
        v_h = qkv[:, :, 2 * INNER + h * HEAD_DIM: 2 * INNER + (h + 1) * HEAD_DIM].astype(bf16)

        # scores (scale already folded into the Q projection), bias/mask/b2 already combined
        s = jnp.einsum('mqd,mkd->mqk', q_h, k_h,
                       preferred_element_type=f32) + biases[h]                # (M, N, N)

        # softmax over keys (f32, exact reciprocal)
        mx = jnp.max(s, axis=-1, keepdims=True)
        p = jnp.exp(s - mx)
        denom = jnp.sum(p, axis=-1, keepdims=True)
        probs = p * pl.reciprocal(denom, approx=False)

        # P @ V, then fold this head's slice of the output projection straight into `out`
        o_h = jnp.einsum('mqk,mkd->mqd', probs.astype(bf16), v_h,
                         preferred_element_type=f32).reshape(M * N, HEAD_DIM)
        out = out + jnp.dot(o_h.astype(bf16),
                            wob_ref[h * HEAD_DIM:(h + 1) * HEAD_DIM, :].astype(bf16),
                            preferred_element_type=f32)

    o_ref[...] = out.astype(o_ref.dtype)


# ------------------------------- the wrapper ---------------------------------
def multi_head_self_te_attention(z, x, params, mask=None):
    m, n, dz = z.shape
    wq, wk, wv, w1, b1, w2, b2, wo, bo = params

    # fused QKV weight with the attention scale folded into the Q columns
    w_qkv = jnp.concatenate([wq * SCALE, wk, wv], axis=1)                     # (DZ, 3*INNER)
    # output projection weight with its bias stacked as one extra row (single DMA)
    wob = jnp.concatenate([wo, bo.reshape(1, dz)], axis=0)                    # (INNER+1, DZ)
    # tiny TE-kernel MLP params packed into one SMEM slab (single DMA, scalar reads in kernel)
    small = jnp.concatenate([w1.reshape(-1), b1.reshape(-1),
                             w2.reshape(-1), b2.reshape(-1)]).astype(jnp.float32)

    # additive mask shared across heads: 0 where attend, NEG where masked.
    # NOTE: fully-masked query rows softmax to ~uniform here instead of the NaNs that
    # torch's masked_fill(-inf) softmax would produce.
    if mask is None:
        add_mask = jnp.zeros((m, n, n), jnp.float32)
    else:
        add_mask = jnp.where(mask, 0.0, NEG).astype(jnp.float32)

    z2 = z.reshape(m * n, dz)                  # token slab for the projections
    x3 = jnp.transpose(x, (2, 0, 1))           # (DX, M, N): coordinate-major for the VPU FMAs

    def vmem_full(a):
        nd = a.ndim
        return pl.BlockSpec(a.shape, lambda i, _nd=nd: (0,) * _nd)

    out2 = pl.pallas_call(
        te_self_attn_kernel,
        out_shape=jax.ShapeDtypeStruct((m * n, dz), jnp.float32),   # lane-contiguous 2-D output
        # single invocation covers the whole (tiny) batch; promote m to a "parallel"
        # leading grid axis once the batch grows (v7x has 2 TensorCores).
        grid=(1,),
        in_specs=[
            vmem_full(z2), vmem_full(x3), vmem_full(add_mask),
            vmem_full(w_qkv), vmem_full(wob),
            pl.BlockSpec(memory_space=pltpu.MemorySpace.SMEM),      # packed scalar params
        ],
        out_specs=pl.BlockSpec((m * n, dz), lambda i: (0, 0)),
        compiler_params=pltpu.CompilerParams(dimension_semantics=("arbitrary",)),
    )(z2, x3, add_mask, w_qkv, wob, small)

    return out2.reshape(m, n, dz), x   # matches (out, xq) of the PyTorch forward


# --------------------------- pure-JAX reference ------------------------------
def reference(z, x, params, mask=None):
    wq, wk, wv, w1, b1, w2, b2, wo, bo = params
    m, n, _ = z.shape
    mask_b = jnp.ones((m, n, n), bool) if mask is None else mask.astype(bool)

    q, k, v = z @ wq, z @ wk, z @ wv
    resh = lambda t: t.reshape(m, n, NUM_HEADS, HEAD_DIM).transpose(0, 2, 1, 3)
    q, k, v = resh(q), resh(k), resh(v)                            # (m, h, n, d)

    diff = x[:, :, None, :] - x[:, None, :, :]                     # (m, n, n, dx)
    hid = jnp.maximum(diff @ w1 + b1[0], 0.0)
    bias = hid @ w2 + b2[0]                                        # (m, n, n, h)
    bias = bias.transpose(0, 3, 1, 2)                              # (m, h, n, n)
    bias = jnp.where(mask_b[:, None], bias, NEG)

    scores = jnp.einsum("mhqd,mhkd->mhqk", q, k) * SCALE + bias
    attn = jax.nn.softmax(scores, axis=-1)
    out = jnp.einsum("mhqk,mhkd->mhqd", attn, v)
    out = out.transpose(0, 2, 1, 3).reshape(m, n, INNER)
    out = out @ wo + bo[0]
    return out, x


# --------------------------------- main ---------------------------------------
def make_params(key):
    # TODO(synk): the PyTorch module takes an arbitrary `kernel: nn.Module`; here it is fixed
    # to the standard tnp choice, a 2-layer MLP dx -> KH -> num_heads with ReLU (dropout p=0).
    ks = jax.random.split(key, 9)
    init = lambda k, shape, fan_in: (
        jax.random.uniform(k, shape, jnp.float32, -1.0, 1.0) / jnp.sqrt(fan_in)
    )
    wq = init(ks[0], (DZ, INNER), DZ)
    wk = init(ks[1], (DZ, INNER), DZ)
    wv = init(ks[2], (DZ, INNER), DZ)
    w1 = init(ks[3], (DX, KH), DX)
    b1 = init(ks[4], (1, KH), DX)
    w2 = init(ks[5], (KH, NUM_HEADS), KH)
    b2 = init(ks[6], (1, NUM_HEADS), KH)
    wo = init(ks[7], (INNER, DZ), INNER)
    bo = init(ks[8], (1, DZ), INNER)
    return wq, wk, wv, w1, b1, w2, b2, wo, bo


if __name__ == "__main__":
    key = jax.random.PRNGKey(0)
    k_z, k_x, k_mask, k_par = jax.random.split(key, 4)

    z = jax.random.normal(k_z, (M, N, DZ), jnp.float32)
    x = jax.random.normal(k_x, (M, N, DX), jnp.float32)
    mask = jax.random.uniform(k_mask, (M, N, N)) > 0.2
    # guard against fully-masked query rows (torch would NaN; we document instead)
    mask = mask.at[:, :, 0].set(True)

    params = make_params(k_par)

    out, x_out = multi_head_self_te_attention(z, x, params, mask=mask)
    out = jax.block_until_ready(out)

    ref_out, _ = reference(z, x, params, mask=mask)
    assert out.shape == (M, N, DZ)
    assert x_out.shape == (M, N, DX)
    err = float(jnp.max(jnp.abs(out - ref_out)))
    # bf16 matmul operands with f32 accumulation -> mixed-precision tolerance vs f32 reference
    assert jnp.allclose(out, ref_out, atol=2e-2, rtol=2e-2), err

    print("KERNEL_OK")
</pallas_src>

<mosaic_0001>
module attributes {stable_mosaic.version = 11 : i64} {
  func.func @te_self_attn_kernel(%arg0: i32, %arg1: memref<32x32xf32, #tpu.memory_space<vmem>>, %arg2: memref<2x2x16xf32, #tpu.memory_space<vmem>>, %arg3: memref<2x16x16xf32, #tpu.memory_space<vmem>>, %arg4: memref<32x96xf32, #tpu.memory_space<vmem>>, %arg5: memref<33x32xf32, #tpu.memory_space<vmem>>, %arg6: memref<82xf32, #tpu.memory_space<smem>>, %arg7: memref<32x32xf32, #tpu.memory_space<vmem>>) attributes {dimension_semantics = [#tpu.dimension_semantics<arbitrary>], iteration_bounds = array<i64: 1>, scalar_prefetch = 0 : i64, scratch_operands = 0 : i64, tpu.core_type = #tpu.core_type<tc>, window_params = [{pipeline_mode = #tpu.pipeline_mode<synchronous>, transform_indices = @transform_0, window_bounds = array<i64: 32, 32>}, {pipeline_mode = #tpu.pipeline_mode<synchronous>, transform_indices = @transform_1, window_bounds = array<i64: 2, 2, 16>}, {pipeline_mode = #tpu.pipeline_mode<synchronous>, transform_indices = @transform_2, window_bounds = array<i64: 2, 16, 16>}, {pipeline_mode = #tpu.pipeline_mode<synchronous>, transform_indices = @transform_3, window_bounds = array<i64: 32, 96>}, {pipeline_mode = #tpu.pipeline_mode<synchronous>, transform_indices = @transform_4, window_bounds = array<i64: 33, 32>}, {transform_indices = @transform_5, window_bounds = array<i64: 82>}, {pipeline_mode = #tpu.pipeline_mode<synchronous>, transform_indices = @transform_6, window_bounds = array<i64: 32, 32>}]} {
    %c0 = arith.constant 0 : index
    %c0_0 = arith.constant 0 : index
    %0 = vector.load %arg1[%c0, %c0_0] : memref<32x32xf32, #tpu.memory_space<vmem>>, vector<32x32xf32>
    %1 = arith.truncf %0 : vector<32x32xf32> to vector<32x32xbf16>
    %c0_1 = arith.constant 0 : index
    %c0_2 = arith.constant 0 : index
    %2 = vector.load %arg4[%c0_1, %c0_2] : memref<32x96xf32, #tpu.memory_space<vmem>>, vector<32x96xf32>
    %3 = arith.truncf %2 : vector<32x96xf32> to vector<32x96xbf16>
    %cst = arith.constant dense<0.000000e+00> : vector<32x96xf32>
    %4 = tpu.matmul %1, %3, %cst {dimension_numbers = #tpu.dot_dimension_numbers<[1], [0], [0], [1], [0, 0, 1, 1], [], []>} : vector<32x32xbf16>, vector<32x96xbf16>, vector<32x96xf32> -> vector<32x96xf32>
    %5 = vector.shape_cast %4 : vector<32x96xf32> to vector<2x16x96xf32>
    %c0_3 = arith.constant 0 : index
    %c0_4 = arith.constant 0 : index
    %c0_5 = arith.constant 0 : index
    %6 = vector.load %arg2[%c0_3, %c0_4, %c0_5] : memref<2x2x16xf32, #tpu.memory_space<vmem>>, vector<1x2x16xf32>
    %7 = vector.shape_cast %6 : vector<1x2x16xf32> to vector<2x16xf32>
    %c1 = arith.constant 1 : index
    %c0_6 = arith.constant 0 : index
    %c0_7 = arith.constant 0 : index
    %8 = vector.load %arg2[%c1, %c0_6, %c0_7] : memref<2x2x16xf32, #tpu.memory_space<vmem>>, vector<1x2x16xf32>
    %9 = vector.shape_cast %8 : vector<1x2x16xf32> to vector<2x16xf32>
    %c0_8 = arith.constant 0 : index
    %c0_9 = arith.constant 0 : index
    %c0_10 = arith.constant 0 : index
    %10 = vector.load %arg3[%c0_8, %c0_9, %c0_10] : memref<2x16x16xf32, #tpu.memory_space<vmem>>, vector<2x16x16xf32>
    %c80 = arith.constant 80 : index
    %11 = memref.load %arg6[%c80] : memref<82xf32, #tpu.memory_space<smem>>
    %12 = vector.broadcast %11 : f32 to vector<2x16x16xf32>
    %13 = arith.addf %10, %12 : vector<2x16x16xf32>
    %c81 = arith.constant 81 : index
    %14 = memref.load %arg6[%c81] : memref<82xf32, #tpu.memory_space<smem>>
    %15 = vector.broadcast %14 : f32 to vector<2x16x16xf32>
    %16 = arith.addf %10, %15 : vector<2x16x16xf32>
    %c0_11 = arith.constant 0 : index
    %17 = memref.load %arg6[%c0_11] : memref<82xf32, #tpu.memory_space<smem>>
    %18 = vector.broadcast %17 : f32 to vector<2x16xf32>
    %19 = arith.mulf %7, %18 : vector<2x16xf32>
    %c16 = arith.constant 16 : index
    %20 = memref.load %arg6[%c16] : memref<82xf32, #tpu.memory_space<smem>>
    %21 = vector.broadcast %20 : f32 to vector<2x16xf32>
    %22 = arith.mulf %9, %21 : vector<2x16xf32>
    %23 = arith.addf %19, %22 : vector<2x16xf32>
    %c32 = arith.constant 32 : index
    %24 = memref.load %arg6[%c32] : memref<82xf32, #tpu.memory_space<smem>>
    %25 = vector.broadcast %24 : f32 to vector<2x16xf32>
    %26 = arith.addf %23, %25 : vector<2x16xf32>
    %27 = vector.shape_cast %26 : vector<2x16xf32> to vector<2x16x1xf32>
    %28 = vector.shape_cast %23 : vector<2x16xf32> to vector<2x1x16xf32>
    %29 = vector.broadcast %27 : vector<2x16x1xf32> to vector<2x16x16xf32>
    %30 = vector.broadcast %28 : vector<2x1x16xf32> to vector<2x16x16xf32>
    %31 = arith.subf %29, %30 : vector<2x16x16xf32>
    %cst_12 = arith.constant 0.000000e+00 : f32
    %32 = vector.broadcast %cst_12 : f32 to vector<2x16x16xf32>
    %33 = arith.maximumf %31, %32 : vector<2x16x16xf32>
    %c48 = arith.constant 48 : index
    %34 = memref.load %arg6[%c48] : memref<82xf32, #tpu.memory_space<smem>>
    %35 = vector.broadcast %34 : f32 to vector<2x16x16xf32>
    %36 = arith.mulf %33, %35 : vector<2x16x16xf32>
    %37 = arith.addf %13, %36 : vector<2x16x16xf32>
    %c49 = arith.constant 49 : index
    %38 = memref.load %arg6[%c49] : memref<82xf32, #tpu.memory_space<smem>>
    %39 = vector.broadcast %38 : f32 to vector<2x16x16xf32>
    %40 = arith.mulf %33, %39 : vector<2x16x16xf32>
    %41 = arith.addf %16, %40 : vector<2x16x16xf32>
    %c1_13 = arith.constant 1 : index
    %42 = memref.load %arg6[%c1_13] : memref<82xf32, #tpu.memory_space<smem>>
    %43 = vector.broadcast %42 : f32 to vector<2x16xf32>
    %44 = arith.mulf %7, %43 : vector<2x16xf32>
    %c17 = arith.constant 17 : index
    %45 = memref.load %arg6[%c17] : memref<82xf32, #tpu.memory_space<smem>>
    %46 = vector.broadcast %45 : f32 to vector<2x16xf32>
    %47 = arith.mulf %9, %46 : vector<2x16xf32>
    %48 = arith.addf %44, %47 : vector<2x16xf32>
    %c33 = arith.constant 33 : index
    %49 = memref.load %arg6[%c33] : memref<82xf32, #tpu.memory_space<smem>>
    %50 = vector.broadcast %49 : f32 to vector<2x16xf32>
    %51 = arith.addf %48, %50 : vector<2x16xf32>
    %52 = vector.shape_cast %51 : vector<2x16xf32> to vector<2x16x1xf32>
    %53 = vector.shape_cast %48 : vector<2x16xf32> to vector<2x1x16xf32>
    %54 = vector.broadcast %52 : vector<2x16x1xf32> to vector<2x16x16xf32>
    %55 = vector.broadcast %53 : vector<2x1x16xf32> to vector<2x16x16xf32>
    %56 = arith.subf %54, %55 : vector<2x16x16xf32>
    %cst_14 = arith.constant 0.000000e+00 : f32
    %57 = vector.broadcast %cst_14 : f32 to vector<2x16x16xf32>
    %58 = arith.maximumf %56, %57 : vector<2x16x16xf32>
    %c50 = arith.constant 50 : index
    %59 = memref.load %arg6[%c50] : memref<82xf32, #tpu.memory_space<smem>>
    %60 = vector.broadcast %59 : f32 to vector<2x16x16xf32>
    %61 = arith.mulf %58, %60 : vector<2x16x16xf32>
    %62 = arith.addf %37, %61 : vector<2x16x16xf32>
    %c51 = arith.constant 51 : index
    %63 = memref.load %arg6[%c51] : memref<82xf32, #tpu.memory_space<smem>>
    %64 = vector.broadcast %63 : f32 to vector<2x16x16xf32>
    %65 = arith.mulf %58, %64 : vector<2x16x16xf32>
    %66 = arith.addf %41, %65 : vector<2x16x16xf32>
    %c2 = arith.constant 2 : index
    %67 = memref.load %arg6[%c2] : memref<82xf32, #tpu.memory_space<smem>>
    %68 = vector.broadcast %67 : f32 to vector<2x16xf32>
    %69 = arith.mulf %7, %68 : vector<2x16xf32>
    %c18 = arith.constant 18 : index
    %70 = memref.load %arg6[%c18] : memref<82xf32, #tpu.memory_space<smem>>
    %71 = vector.broadcast %70 : f32 to vector<2x16xf32>
    %72 = arith.mulf %9, %71 : vector<2x16xf32>
    %73 = arith.addf %69, %72 : vector<2x16xf32>
    %c34 = arith.constant 34 : index
    %74 = memref.load %arg6[%c34] : memref<82xf32, #tpu.memory_space<smem>>
    %75 = vector.broadcast %74 : f32 to vector<2x16xf32>
    %76 = arith.addf %73, %75 : vector<2x16xf32>
    %77 = vector.shape_cast %76 : vector<2x16xf32> to vector<2x16x1xf32>
    %78 = vector.shape_cast %73 : vector<2x16xf32> to vector<2x1x16xf32>
    %79 = vector.broadcast %77 : vector<2x16x1xf32> to vector<2x16x16xf32>
    %80 = vector.broadcast %78 : vector<2x1x16xf32> to vector<2x16x16xf32>
    %81 = arith.subf %79, %80 : vector<2x16x16xf32>
    %cst_15 = arith.constant 0.000000e+00 : f32
    %82 = vector.broadcast %cst_15 : f32 to vector<2x16x16xf32>
    %83 = arith.maximumf %81, %82 : vector<2x16x16xf32>
    %c52 = arith.constant 52 : index
    %84 = memref.load %arg6[%c52] : memref<82xf32, #tpu.memory_space<smem>>
    %85 = vector.broadcast %84 : f32 to vector<2x16x16xf32>
    %86 = arith.mulf %83, %85 : vector<2x16x16xf32>
    %87 = arith.addf %62, %86 : vector<2x16x16xf32>
    %c53 = arith.constant 53 : index
    %88 = memref.load %arg6[%c53] : memref<82xf32, #tpu.memory_space<smem>>
    %89 = vector.broadcast %88 : f32 to vector<2x16x16xf32>
    %90 = arith.mulf %83, %89 : vector<2x16x16xf32>
    %91 = arith.addf %66, %90 : vector<2x16x16xf32>
    %c3 = arith.constant 3 : index
    %92 = memref.load %arg6[%c3] : memref<82xf32, #tpu.memory_space<smem>>
    %93 = vector.broadcast %92 : f32 to vector<2x16xf32>
    %94 = arith.mulf %7, %93 : vector<2x16xf32>
    %c19 = arith.constant 19 : index
    %95 = memref.load %arg6[%c19] : memref<82xf32, #tpu.memory_space<smem>>
    %96 = vector.broadcast %95 : f32 to vector<2x16xf32>
    %97 = arith.mulf %9, %96 : vector<2x16xf32>
    %98 = arith.addf %94, %97 : vector<2x16xf32>
    %c35 = arith.constant 35 : index
    %99 = memref.load %arg6[%c35] : memref<82xf32, #tpu.memory_space<smem>>
    %100 = vector.broadcast %99 : f32 to vector<2x16xf32>
    %101 = arith.addf %98, %100 : vector<2x16xf32>
    %102 = vector.shape_cast %101 : vector<2x16xf32> to vector<2x16x1xf32>
    %103 = vector.shape_cast %98 : vector<2x16xf32> to vector<2x1x16xf32>
    %104 = vector.broadcast %102 : vector<2x16x1xf32> to vector<2x16x16xf32>
    %105 = vector.broadcast %103 : vector<2x1x16xf32> to vector<2x16x16xf32>
    %106 = arith.subf %104, %105 : vector<2x16x16xf32>
    %cst_16 = arith.constant 0.000000e+00 : f32
    %107 = vector.broadcast %cst_16 : f32 to vector<2x16x16xf32>
    %108 = arith.maximumf %106, %107 : vector<2x16x16xf32>
    %c54 = arith.constant 54 : index
    %109 = memref.load %arg6[%c54] : memref<82xf32, #tpu.memory_space<smem>>
    %110 = vector.broadcast %109 : f32 to vector<2x16x16xf32>
    %111 = arith.mulf %108, %110 : vector<2x16x16xf32>
    %112 = arith.addf %87, %111 : vector<2x16x16xf32>
    %c55 = arith.constant 55 : index
    %113 = memref.load %arg6[%c55] : memref<82xf32, #tpu.memory_space<smem>>
    %114 = vector.broadcast %113 : f32 to vector<2x16x16xf32>
    %115 = arith.mulf %108, %114 : vector<2x16x16xf32>
    %116 = arith.addf %91, %115 : vector<2x16x16xf32>
    %c4 = arith.constant 4 : index
    %117 = memref.load %arg6[%c4] : memref<82xf32, #tpu.memory_space<smem>>
    %118 = vector.broadcast %117 : f32 to vector<2x16xf32>
    %119 = arith.mulf %7, %118 : vector<2x16xf32>
    %c20 = arith.constant 20 : index
    %120 = memref.load %arg6[%c20] : memref<82xf32, #tpu.memory_space<smem>>
    %121 = vector.broadcast %120 : f32 to vector<2x16xf32>
    %122 = arith.mulf %9, %121 : vector<2x16xf32>
    %123 = arith.addf %119, %122 : vector<2x16xf32>
    %c36 = arith.constant 36 : index
    %124 = memref.load %arg6[%c36] : memref<82xf32, #tpu.memory_space<smem>>
    %125 = vector.broadcast %124 : f32 to vector<2x16xf32>
    %126 = arith.addf %123, %125 : vector<2x16xf32>
    %127 = vector.shape_cast %126 : vector<2x16xf32> to vector<2x16x1xf32>
    %128 = vector.shape_cast %123 : vector<2x16xf32> to vector<2x1x16xf32>
    %129 = vector.broadcast %127 : vector<2x16x1xf32> to vector<2x16x16xf32>
    %130 = vector.broadcast %128 : vector<2x1x16xf32> to vector<2x16x16xf32>
    %131 = arith.subf %129, %130 : vector<2x16x16xf32>
    %cst_17 = arith.constant 0.000000e+00 : f32
    %132 = vector.broadcast %cst_17 : f32 to vector<2x16x16xf32>
    %133 = arith.maximumf %131, %132 : vector<2x16x16xf32>
    %c56 = arith.constant 56 : index
    %134 = memref.load %arg6[%c56] : memref<82xf32, #tpu.memory_space<smem>>
    %135 = vector.broadcast %134 : f32 to vector<2x16x16xf32>
    %136 = arith.mulf %133, %135 : vector<2x16x16xf32>
    %137 = arith.addf %112, %136 : vector<2x16x16xf32>
    %c57 = arith.constant 57 : index
    %138 = memref.load %arg6[%c57] : memref<82xf32, #tpu.memory_space<smem>>
    %139 = vector.broadcast %138 : f32 to vector<2x16x16xf32>
    %140 = arith.mulf %133, %139 : vector<2x16x16xf32>
    %141 = arith.addf %116, %140 : vector<2x16x16xf32>
    %c5 = arith.constant 5 : index
    %142 = memref.load %arg6[%c5] : memref<82xf32, #tpu.memory_space<smem>>
    %143 = vector.broadcast %142 : f32 to vector<2x16xf32>
    %144 = arith.mulf %7, %143 : vector<2x16xf32>
    %c21 = arith.constant 21 : index
    %145 = memref.load %arg6[%c21] : memref<82xf32, #tpu.memory_space<smem>>
    %146 = vector.broadcast %145 : f32 to vector<2x16xf32>
    %147 = arith.mulf %9, %146 : vector<2x16xf32>
    %148 = arith.addf %144, %147 : vector<2x16xf32>
    %c37 = arith.constant 37 : index
    %149 = memref.load %arg6[%c37] : memref<82xf32, #tpu.memory_space<smem>>
    %150 = vector.broadcast %149 : f32 to vector<2x16xf32>
    %151 = arith.addf %148, %150 : vector<2x16xf32>
    %152 = vector.shape_cast %151 : vector<2x16xf32> to vector<2x16x1xf32>
    %153 = vector.shape_cast %148 : vector<2x16xf32> to vector<2x1x16xf32>
    %154 = vector.broadcast %152 : vector<2x16x1xf32> to vector<2x16x16xf32>
    %155 = vector.broadcast %153 : vector<2x1x16xf32> to vector<2x16x16xf32>
    %156 = arith.subf %154, %155 : vector<2x16x16xf32>
    %cst_18 = arith.constant 0.000000e+00 : f32
    %157 = vector.broadcast %cst_18 : f32 to vector<2x16x16xf32>
    %158 = arith.maximumf %156, %157 : vector<2x16x16xf32>
    %c58 = arith.constant 58 : index
    %159 = memref.load %arg6[%c58] : memref<82xf32, #tpu.memory_space<smem>>
    %160 = vector.broadcast %159 : f32 to vector<2x16x16xf32>
    %161 = arith.mulf %158, %160 : vector<2x16x16xf32>
    %162 = arith.addf %137, %161 : vector<2x16x16xf32>
    %c59 = arith.constant 59 : index
    %163 = memref.load %arg6[%c59] : memref<82xf32, #tpu.memory_space<smem>>
    %164 = vector.broadcast %163 : f32 to vector<2x16x16xf32>
    %165 = arith.mulf %158, %164 : vector<2x16x16xf32>
    %166 = arith.addf %141, %165 : vector<2x16x16xf32>
    %c6 = arith.constant 6 : index
    %167 = memref.load %arg6[%c6] : memref<82xf32, #tpu.memory_space<smem>>
    %168 = vector.broadcast %167 : f32 to vector<2x16xf32>
    %169 = arith.mulf %7, %168 : vector<2x16xf32>
    %c22 = arith.constant 22 : index
    %170 = memref.load %arg6[%c22] : memref<82xf32, #tpu.memory_space<smem>>
    %171 = vector.broadcast %170 : f32 to vector<2x16xf32>
    %172 = arith.mulf %9, %171 : vector<2x16xf32>
    %173 = arith.addf %169, %172 : vector<2x16xf32>
    %c38 = arith.constant 38 : index
    %174 = memref.load %arg6[%c38] : memref<82xf32, #tpu.memory_space<smem>>
    %175 = vector.broadcast %174 : f32 to vector<2x16xf32>
    %176 = arith.addf %173, %175 : vector<2x16xf32>
    %177 = vector.shape_cast %176 : vector<2x16xf32> to vector<2x16x1xf32>
    %178 = vector.shape_cast %173 : vector<2x16xf32> to vector<2x1x16xf32>
    %179 = vector.broadcast %177 : vector<2x16x1xf32> to vector<2x16x16xf32>
    %180 = vector.broadcast %178 : vector<2x1x16xf32> to vector<2x16x16xf32>
    %181 = arith.subf %179, %180 : vector<2x16x16xf32>
    %cst_19 = arith.constant 0.000000e+00 : f32
    %182 = vector.broadcast %cst_19 : f32 to vector<2x16x16xf32>
    %183 = arith.maximumf %181, %182 : vector<2x16x16xf32>
    %c60 = arith.constant 60 : index
    %184 = memref.load %arg6[%c60] : memref<82xf32, #tpu.memory_space<smem>>
    %185 = vector.broadcast %184 : f32 to vector<2x16x16xf32>
    %186 = arith.mulf %183, %185 : vector<2x16x16xf32>
    %187 = arith.addf %162, %186 : vector<2x16x16xf32>
    %c61 = arith.constant 61 : index
    %188 = memref.load %arg6[%c61] : memref<82xf32, #tpu.memory_space<smem>>
    %189 = vector.broadcast %188 : f32 to vector<2x16x16xf32>
    %190 = arith.mulf %183, %189 : vector<2x16x16xf32>
    %191 = arith.addf %166, %190 : vector<2x16x16xf32>
    %c7 = arith.constant 7 : index
    %192 = memref.load %arg6[%c7] : memref<82xf32, #tpu.memory_space<smem>>
    %193 = vector.broadcast %192 : f32 to vector<2x16xf32>
    %194 = arith.mulf %7, %193 : vector<2x16xf32>
    %c23 = arith.constant 23 : index
    %195 = memref.load %arg6[%c23] : memref<82xf32, #tpu.memory_space<smem>>
    %196 = vector.broadcast %195 : f32 to vector<2x16xf32>
    %197 = arith.mulf %9, %196 : vector<2x16xf32>
    %198 = arith.addf %194, %197 : vector<2x16xf32>
    %c39 = arith.constant 39 : index
    %199 = memref.load %arg6[%c39] : memref<82xf32, #tpu.memory_space<smem>>
    %200 = vector.broadcast %199 : f32 to vector<2x16xf32>
    %201 = arith.addf %198, %200 : vector<2x16xf32>
    %202 = vector.shape_cast %201 : vector<2x16xf32> to vector<2x16x1xf32>
    %203 = vector.shape_cast %198 : vector<2x16xf32> to vector<2x1x16xf32>
    %204 = vector.broadcast %202 : vector<2x16x1xf32> to vector<2x16x16xf32>
    %205 = vector.broadcast %203 : vector<2x1x16xf32> to vector<2x16x16xf32>
    %206 = arith.subf %204, %205 : vector<2x16x16xf32>
    %cst_20 = arith.constant 0.000000e+00 : f32
    %207 = vector.broadcast %cst_20 : f32 to vector<2x16x16xf32>
    %208 = arith.maximumf %206, %207 : vector<2x16x16xf32>
    %c62 = arith.constant 62 : index
    %209 = memref.load %arg6[%c62] : memref<82xf32, #tpu.memory_space<smem>>
    %210 = vector.broadcast %209 : f32 to vector<2x16x16xf32>
    %211 = arith.mulf %208, %210 : vector<2x16x16xf32>
    %212 = arith.addf %187, %211 : vector<2x16x16xf32>
    %c63 = arith.constant 63 : index
    %213 = memref.load %arg6[%c63] : memref<82xf32, #tpu.memory_space<smem>>
    %214 = vector.broadcast %213 : f32 to vector<2x16x16xf32>
    %215 = arith.mulf %208, %214 : vector<2x16x16xf32>
    %216 = arith.addf %191, %215 : vector<2x16x16xf32>
    %c8 = arith.constant 8 : index
    %217 = memref.load %arg6[%c8] : memref<82xf32, #tpu.memory_space<smem>>
    %218 = vector.broadcast %217 : f32 to vector<2x16xf32>
    %219 = arith.mulf %7, %218 : vector<2x16xf32>
    %c24 = arith.constant 24 : index
    %220 = memref.load %arg6[%c24] : memref<82xf32, #tpu.memory_space<smem>>
    %221 = vector.broadcast %220 : f32 to vector<2x16xf32>
    %222 = arith.mulf %9, %221 : vector<2x16xf32>
    %223 = arith.addf %219, %222 : vector<2x16xf32>
    %c40 = arith.constant 40 : index
    %224 = memref.load %arg6[%c40] : memref<82xf32, #tpu.memory_space<smem>>
    %225 = vector.broadcast %224 : f32 to vector<2x16xf32>
    %226 = arith.addf %223, %225 : vector<2x16xf32>
    %227 = vector.shape_cast %226 : vector<2x16xf32> to vector<2x16x1xf32>
    %228 = vector.shape_cast %223 : vector<2x16xf32> to vector<2x1x16xf32>
    %229 = vector.broadcast %227 : vector<2x16x1xf32> to vector<2x16x16xf32>
    %230 = vector.broadcast %228 : vector<2x1x16xf32> to vector<2x16x16xf32>
    %231 = arith.subf %229, %230 : vector<2x16x16xf32>
    %cst_21 = arith.constant 0.000000e+00 : f32
    %232 = vector.broadcast %cst_21 : f32 to vector<2x16x16xf32>
    %233 = arith.maximumf %231, %232 : vector<2x16x16xf32>
    %c64 = arith.constant 64 : index
    %234 = memref.load %arg6[%c64] : memref<82xf32, #tpu.memory_space<smem>>
    %235 = vector.broadcast %234 : f32 to vector<2x16x16xf32>
    %236 = arith.mulf %233, %235 : vector<2x16x16xf32>
    %237 = arith.addf %212, %236 : vector<2x16x16xf32>
    %c65 = arith.constant 65 : index
    %238 = memref.load %arg6[%c65] : memref<82xf32, #tpu.memory_space<smem>>
    %239 = vector.broadcast %238 : f32 to vector<2x16x16xf32>
    %240 = arith.mulf %233, %239 : vector<2x16x16xf32>
    %241 = arith.addf %216, %240 : vector<2x16x16xf32>
    %c9 = arith.constant 9 : index
    %242 = memref.load %arg6[%c9] : memref<82xf32, #tpu.memory_space<smem>>
    %243 = vector.broadcast %242 : f32 to vector<2x16xf32>
    %244 = arith.mulf %7, %243 : vector<2x16xf32>
    %c25 = arith.constant 25 : index
    %245 = memref.load %arg6[%c25] : memref<82xf32, #tpu.memory_space<smem>>
    %246 = vector.broadcast %245 : f32 to vector<2x16xf32>
    %247 = arith.mulf %9, %246 : vector<2x16xf32>
    %248 = arith.addf %244, %247 : vector<2x16xf32>
    %c41 = arith.constant 41 : index
    %249 = memref.load %arg6[%c41] : memref<82xf32, #tpu.memory_space<smem>>
    %250 = vector.broadcast %249 : f32 to vector<2x16xf32>
    %251 = arith.addf %248, %250 : vector<2x16xf32>
    %252 = vector.shape_cast %251 : vector<2x16xf32> to vector<2x16x1xf32>
    %253 = vector.shape_cast %248 : vector<2x16xf32> to vector<2x1x16xf32>
    %254 = vector.broadcast %252 : vector<2x16x1xf32> to vector<2x16x16xf32>
    %255 = vector.broadcast %253 : vector<2x1x16xf32> to vector<2x16x16xf32>
    %256 = arith.subf %254, %255 : vector<2x16x16xf32>
    %cst_22 = arith.constant 0.000000e+00 : f32
    %257 = vector.broadcast %cst_22 : f32 to vector<2x16x16xf32>
    %258 = arith.maximumf %256, %257 : vector<2x16x16xf32>
    %c66 = arith.constant 66 : index
    %259 = memref.load %arg6[%c66] : memref<82xf32, #tpu.memory_space<smem>>
    %260 = vector.broadcast %259 : f32 to vector<2x16x16xf32>
    %261 = arith.mulf %258, %260 : vector<2x16x16xf32>
    %262 = arith.addf %237, %261 : vector<2x16x16xf32>
    %c67 = arith.constant 67 : index
    %263 = memref.load %arg6[%c67] : memref<82xf32, #tpu.memory_space<smem>>
    %264 = vector.broadcast %263 : f32 to vector<2x16x16xf32>
    %265 = arith.mulf %258, %264 : vector<2x16x16xf32>
    %266 = arith.addf %241, %265 : vector<2x16x16xf32>
    %c10 = arith.constant 10 : index
    %267 = memref.load %arg6[%c10] : memref<82xf32, #tpu.memory_space<smem>>
    %268 = vector.broadcast %267 : f32 to vector<2x16xf32>
    %269 = arith.mulf %7, %268 : vector<2x16xf32>
    %c26 = arith.constant 26 : index
    %270 = memref.load %arg6[%c26] : memref<82xf32, #tpu.memory_space<smem>>
    %271 = vector.broadcast %270 : f32 to vector<2x16xf32>
    %272 = arith.mulf %9, %271 : vector<2x16xf32>
    %273 = arith.addf %269, %272 : vector<2x16xf32>
    %c42 = arith.constant 42 : index
    %274 = memref.load %arg6[%c42] : memref<82xf32, #tpu.memory_space<smem>>
    %275 = vector.broadcast %274 : f32 to vector<2x16xf32>
    %276 = arith.addf %273, %275 : vector<2x16xf32>
    %277 = vector.shape_cast %276 : vector<2x16xf32> to vector<2x16x1xf32>
    %278 = vector.shape_cast %273 : vector<2x16xf32> to vector<2x1x16xf32>
    %279 = vector.broadcast %277 : vector<2x16x1xf32> to vector<2x16x16xf32>
    %280 = vector.broadcast %278 : vector<2x1x16xf32> to vector<2x16x16xf32>
    %281 = arith.subf %279, %280 : vector<2x16x16xf32>
    %cst_23 = arith.constant 0.000000e+00 : f32
    %282 = vector.broadcast %cst_23 : f32 to vector<2x16x16xf32>
    %283 = arith.maximumf %281, %282 : vector<2x16x16xf32>
    %c68 = arith.constant 68 : index
    %284 = memref.load %arg6[%c68] : memref<82xf32, #tpu.memory_space<smem>>
    %285 = vector.broadcast %284 : f32 to vector<2x16x16xf32>
    %286 = arith.mulf %283, %285 : vector<2x16x16xf32>
    %287 = arith.addf %262, %286 : vector<2x16x16xf32>
    %c69 = arith.constant 69 : index
    %288 = memref.load %arg6[%c69] : memref<82xf32, #tpu.memory_space<smem>>
    %289 = vector.broadcast %288 : f32 to vector<2x16x16xf32>
    %290 = arith.mulf %283, %289 : vector<2x16x16xf32>
    %291 = arith.addf %266, %290 : vector<2x16x16xf32>
    %c11 = arith.constant 11 : index
    %292 = memref.load %arg6[%c11] : memref<82xf32, #tpu.memory_space<smem>>
    %293 = vector.broadcast %292 : f32 to vector<2x16xf32>
    %294 = arith.mulf %7, %293 : vector<2x16xf32>
    %c27 = arith.constant 27 : index
    %295 = memref.load %arg6[%c27] : memref<82xf32, #tpu.memory_space<smem>>
    %296 = vector.broadcast %295 : f32 to vector<2x16xf32>
    %297 = arith.mulf %9, %296 : vector<2x16xf32>
    %298 = arith.addf %294, %297 : vector<2x16xf32>
    %c43 = arith.constant 43 : index
    %299 = memref.load %arg6[%c43] : memref<82xf32, #tpu.memory_space<smem>>
    %300 = vector.broadcast %299 : f32 to vector<2x16xf32>
    %301 = arith.addf %298, %300 : vector<2x16xf32>
    %302 = vector.shape_cast %301 : vector<2x16xf32> to vector<2x16x1xf32>
    %303 = vector.shape_cast %298 : vector<2x16xf32> to vector<2x1x16xf32>
    %304 = vector.broadcast %302 : vector<2x16x1xf32> to vector<2x16x16xf32>
    %305 = vector.broadcast %303 : vector<2x1x16xf32> to vector<2x16x16xf32>
    %306 = arith.subf %304, %305 : vector<2x16x16xf32>
    %cst_24 = arith.constant 0.000000e+00 : f32
    %307 = vector.broadcast %cst_24 : f32 to vector<2x16x16xf32>
    %308 = arith.maximumf %306, %307 : vector<2x16x16xf32>
    %c70 = arith.constant 70 : index
    %309 = memref.load %arg6[%c70] : memref<82xf32, #tpu.memory_space<smem>>
    %310 = vector.broadcast %309 : f32 to vector<2x16x16xf32>
    %311 = arith.mulf %308, %310 : vector<2x16x16xf32>
    %312 = arith.addf %287, %311 : vector<2x16x16xf32>
    %c71 = arith.constant 71 : index
    %313 = memref.load %arg6[%c71] : memref<82xf32, #tpu.memory_space<smem>>
    %314 = vector.broadcast %313 : f32 to vector<2x16x16xf32>
    %315 = arith.mulf %308, %314 : vector<2x16x16xf32>
    %316 = arith.addf %291, %315 : vector<2x16x16xf32>
    %c12 = arith.constant 12 : index
    %317 = memref.load %arg6[%c12] : memref<82xf32, #tpu.memory_space<smem>>
    %318 = vector.broadcast %317 : f32 to vector<2x16xf32>
    %319 = arith.mulf %7, %318 : vector<2x16xf32>
    %c28 = arith.constant 28 : index
    %320 = memref.load %arg6[%c28] : memref<82xf32, #tpu.memory_space<smem>>
    %321 = vector.broadcast %320 : f32 to vector<2x16xf32>
    %322 = arith.mulf %9, %321 : vector<2x16xf32>
    %323 = arith.addf %319, %322 : vector<2x16xf32>
    %c44 = arith.constant 44 : index
    %324 = memref.load %arg6[%c44] : memref<82xf32, #tpu.memory_space<smem>>
    %325 = vector.broadcast %324 : f32 to vector<2x16xf32>
    %326 = arith.addf %323, %325 : vector<2x16xf32>
    %327 = vector.shape_cast %326 : vector<2x16xf32> to vector<2x16x1xf32>
    %328 = vector.shape_cast %323 : vector<2x16xf32> to vector<2x1x16xf32>
    %329 = vector.broadcast %327 : vector<2x16x1xf32> to vector<2x16x16xf32>
    %330 = vector.broadcast %328 : vector<2x1x16xf32> to vector<2x16x16xf32>
    %331 = arith.subf %329, %330 : vector<2x16x16xf32>
    %cst_25 = arith.constant 0.000000e+00 : f32
    %332 = vector.broadcast %cst_25 : f32 to vector<2x16x16xf32>
    %333 = arith.maximumf %331, %332 : vector<2x16x16xf32>
    %c72 = arith.constant 72 : index
    %334 = memref.load %arg6[%c72] : memref<82xf32, #tpu.memory_space<smem>>
    %335 = vector.broadcast %334 : f32 to vector<2x16x16xf32>
    %336 = arith.mulf %333, %335 : vector<2x16x16xf32>
    %337 = arith.addf %312, %336 : vector<2x16x16xf32>
    %c73 = arith.constant 73 : index
    %338 = memref.load %arg6[%c73] : memref<82xf32, #tpu.memory_space<smem>>
    %339 = vector.broadcast %338 : f32 to vector<2x16x16xf32>
    %340 = arith.mulf %333, %339 : vector<2x16x16xf32>
    %341 = arith.addf %316, %340 : vector<2x16x16xf32>
    %c13 = arith.constant 13 : index
    %342 = memref.load %arg6[%c13] : memref<82xf32, #tpu.memory_space<smem>>
    %343 = vector.broadcast %342 : f32 to vector<2x16xf32>
    %344 = arith.mulf %7, %343 : vector<2x16xf32>
    %c29 = arith.constant 29 : index
    %345 = memref.load %arg6[%c29] : memref<82xf32, #tpu.memory_space<smem>>
    %346 = vector.broadcast %345 : f32 to vector<2x16xf32>
    %347 = arith.mulf %9, %346 : vector<2x16xf32>
    %348 = arith.addf %344, %347 : vector<2x16xf32>
    %c45 = arith.constant 45 : index
    %349 = memref.load %arg6[%c45] : memref<82xf32, #tpu.memory_space<smem>>
    %350 = vector.broadcast %349 : f32 to vector<2x16xf32>
    %351 = arith.addf %348, %350 : vector<2x16xf32>
    %352 = vector.shape_cast %351 : vector<2x16xf32> to vector<2x16x1xf32>
    %353 = vector.shape_cast %348 : vector<2x16xf32> to vector<2x1x16xf32>
    %354 = vector.broadcast %352 : vector<2x16x1xf32> to vector<2x16x16xf32>
    %355 = vector.broadcast %353 : vector<2x1x16xf32> to vector<2x16x16xf32>
    %356 = arith.subf %354, %355 : vector<2x16x16xf32>
    %cst_26 = arith.constant 0.000000e+00 : f32
    %357 = vector.broadcast %cst_26 : f32 to vector<2x16x16xf32>
    %358 = arith.maximumf %356, %357 : vector<2x16x16xf32>
    %c74 = arith.constant 74 : index
    %359 = memref.load %arg6[%c74] : memref<82xf32, #tpu.memory_space<smem>>
    %360 = vector.broadcast %359 : f32 to vector<2x16x16xf32>
    %361 = arith.mulf %358, %360 : vector<2x16x16xf32>
    %362 = arith.addf %337, %361 : vector<2x16x16xf32>
    %c75 = arith.constant 75 : index
    %363 = memref.load %arg6[%c75] : memref<82xf32, #tpu.memory_space<smem>>
    %364 = vector.broadcast %363 : f32 to vector<2x16x16xf32>
    %365 = arith.mulf %358, %364 : vector<2x16x16xf32>
    %366 = arith.addf %341, %365 : vector<2x16x16xf32>
    %c14 = arith.constant 14 : index
    %367 = memref.load %arg6[%c14] : memref<82xf32, #tpu.memory_space<smem>>
    %368 = vector.broadcast %367 : f32 to vector<2x16xf32>
    %369 = arith.mulf %7, %368 : vector<2x16xf32>
    %c30 = arith.constant 30 : index
    %370 = memref.load %arg6[%c30] : memref<82xf32, #tpu.memory_space<smem>>
    %371 = vector.broadcast %370 : f32 to vector<2x16xf32>
    %372 = arith.mulf %9, %371 : vector<2x16xf32>
    %373 = arith.addf %369, %372 : vector<2x16xf32>
    %c46 = arith.constant 46 : index
    %374 = memref.load %arg6[%c46] : memref<82xf32, #tpu.memory_space<smem>>
    %375 = vector.broadcast %374 : f32 to vector<2x16xf32>
    %376 = arith.addf %373, %375 : vector<2x16xf32>
    %377 = vector.shape_cast %376 : vector<2x16xf32> to vector<2x16x1xf32>
    %378 = vector.shape_cast %373 : vector<2x16xf32> to vector<2x1x16xf32>
    %379 = vector.broadcast %377 : vector<2x16x1xf32> to vector<2x16x16xf32>
    %380 = vector.broadcast %378 : vector<2x1x16xf32> to vector<2x16x16xf32>
    %381 = arith.subf %379, %380 : vector<2x16x16xf32>
    %cst_27 = arith.constant 0.000000e+00 : f32
    %382 = vector.broadcast %cst_27 : f32 to vector<2x16x16xf32>
    %383 = arith.maximumf %381, %382 : vector<2x16x16xf32>
    %c76 = arith.constant 76 : index
    %384 = memref.load %arg6[%c76] : memref<82xf32, #tpu.memory_space<smem>>
    %385 = vector.broadcast %384 : f32 to vector<2x16x16xf32>
    %386 = arith.mulf %383, %385 : vector<2x16x16xf32>
    %387 = arith.addf %362, %386 : vector<2x16x16xf32>
    %c77 = arith.constant 77 : index
    %388 = memref.load %arg6[%c77] : memref<82xf32, #tpu.memory_space<smem>>
    %389 = vector.broadcast %388 : f32 to vector<2x16x16xf32>
    %390 = arith.mulf %383, %389 : vector<2x16x16xf32>
    %391 = arith.addf %366, %390 : vector<2x16x16xf32>
    %c15 = arith.constant 15 : index
    %392 = memref.load %arg6[%c15] : memref<82xf32, #tpu.memory_space<smem>>
    %393 = vector.broadcast %392 : f32 to vector<2x16xf32>
    %394 = arith.mulf %7, %393 : vector<2x16xf32>
    %c31 = arith.constant 31 : index
    %395 = memref.load %arg6[%c31] : memref<82xf32, #tpu.memory_space<smem>>
    %396 = vector.broadcast %395 : f32 to vector<2x16xf32>
    %397 = arith.mulf %9, %396 : vector<2x16xf32>
    %398 = arith.addf %394, %397 : vector<2x16xf32>
    %c47 = arith.constant 47 : index
    %399 = memref.load %arg6[%c47] : memref<82xf32, #tpu.memory_space<smem>>
    %400 = vector.broadcast %399 : f32 to vector<2x16xf32>
    %401 = arith.addf %398, %400 : vector<2x16xf32>
    %402 = vector.shape_cast %401 : vector<2x16xf32> to vector<2x16x1xf32>
    %403 = vector.shape_cast %398 : vector<2x16xf32> to vector<2x1x16xf32>
    %404 = vector.broadcast %402 : vector<2x16x1xf32> to vector<2x16x16xf32>
    %405 = vector.broadcast %403 : vector<2x1x16xf32> to vector<2x16x16xf32>
    %406 = arith.subf %404, %405 : vector<2x16x16xf32>
    %cst_28 = arith.constant 0.000000e+00 : f32
    %407 = vector.broadcast %cst_28 : f32 to vector<2x16x16xf32>
    %408 = arith.maximumf %406, %407 : vector<2x16x16xf32>
    %c78 = arith.constant 78 : index
    %409 = memref.load %arg6[%c78] : memref<82xf32, #tpu.memory_space<smem>>
    %410 = vector.broadcast %409 : f32 to vector<2x16x16xf32>
    %411 = arith.mulf %408, %410 : vector<2x16x16xf32>
    %412 = arith.addf %387, %411 : vector<2x16x16xf32>
    %c79 = arith.constant 79 : index
    %413 = memref.load %arg6[%c79] : memref<82xf32, #tpu.memory_space<smem>>
    %414 = vector.broadcast %413 : f32 to vector<2x16x16xf32>
    %415 = arith.mulf %408, %414 : vector<2x16x16xf32>
    %416 = arith.addf %391, %415 : vector<2x16x16xf32>
    %c32_29 = arith.constant 32 : index
    %c0_30 = arith.constant 0 : index
    %417 = vector.load %arg5[%c32_29, %c0_30] : memref<33x32xf32, #tpu.memory_space<vmem>>, vector<1x32xf32>
    %418 = vector.shape_cast %417 : vector<1x32xf32> to vector<1x32xf32>
    %419 = vector.broadcast %418 : vector<1x32xf32> to vector<32x32xf32>
    %420 = vector.extract_strided_slice %5 {offsets = [0, 0, 0], sizes = [2, 16, 16], strides = [1, 1, 1]} : vector<2x16x96xf32> to vector<2x16x16xf32>
    %421 = arith.truncf %420 : vector<2x16x16xf32> to vector<2x16x16xbf16>
    %422 = vector.extract_strided_slice %5 {offsets = [0, 0, 32], sizes = [2, 16, 16], strides = [1, 1, 1]} : vector<2x16x96xf32> to vector<2x16x16xf32>
    %423 = arith.truncf %422 : vector<2x16x16xf32> to vector<2x16x16xbf16>
    %424 = vector.extract_strided_slice %5 {offsets = [0, 0, 64], sizes = [2, 16, 16], strides = [1, 1, 1]} : vector<2x16x96xf32> to vector<2x16x16xf32>
    %425 = arith.truncf %424 : vector<2x16x16xf32> to vector<2x16x16xbf16>
    "tpu.trace_start"() <{level = 10 : i32, message = "mqd,mkd->mqk"}> : () -> ()
    %cst_31 = arith.constant dense<0.000000e+00> : vector<2x16x16xf32>
    %426 = tpu.matmul %421, %423, %cst_31 {dimension_numbers = #tpu.dot_dimension_numbers<[2], [2], [1], [1], [0, 0, 0, 1, 1, 1], [0], [0]>} : vector<2x16x16xbf16>, vector<2x16x16xbf16>, vector<2x16x16xf32> -> vector<2x16x16xf32>
    "tpu.trace_stop"() : () -> ()
    %427 = arith.addf %426, %412 : vector<2x16x16xf32>
    %cst_32 = arith.constant dense<0xFF800000> : vector<2x16xf32>
    %428 = vector.multi_reduction <maximumf>, %427, %cst_32 [2] : vector<2x16x16xf32> to vector<2x16xf32>
    %429 = vector.shape_cast %428 : vector<2x16xf32> to vector<2x16x1xf32>
    %430 = vector.broadcast %429 : vector<2x16x1xf32> to vector<2x16x16xf32>
    %431 = arith.subf %427, %430 : vector<2x16x16xf32>
    %432 = math.exp %431 : vector<2x16x16xf32>
    %cst_33 = arith.constant dense<0.000000e+00> : vector<2x16xf32>
    %433 = vector.multi_reduction <add>, %432, %cst_33 [2] : vector<2x16x16xf32> to vector<2x16xf32>
    %434 = vector.shape_cast %433 : vector<2x16xf32> to vector<2x16x1xf32>
    %435 = tpu.reciprocal %434 : vector<2x16x1xf32> -> vector<2x16x1xf32>
    %436 = vector.broadcast %435 : vector<2x16x1xf32> to vector<2x16x16xf32>
    %437 = arith.mulf %432, %436 : vector<2x16x16xf32>
    %438 = arith.truncf %437 : vector<2x16x16xf32> to vector<2x16x16xbf16>
    "tpu.trace_start"() <{level = 10 : i32, message = "mqk,mkd->mqd"}> : () -> ()
    %cst_34 = arith.constant dense<0.000000e+00> : vector<2x16x16xf32>
    %439 = tpu.matmul %438, %425, %cst_34 {dimension_numbers = #tpu.dot_dimension_numbers<[2], [1], [1], [2], [0, 0, 0, 1, 1, 2], [0], [0]>} : vector<2x16x16xbf16>, vector<2x16x16xbf16>, vector<2x16x16xf32> -> vector<2x16x16xf32>
    "tpu.trace_stop"() : () -> ()
    %440 = vector.shape_cast %439 : vector<2x16x16xf32> to vector<32x16xf32>
    %441 = arith.truncf %440 : vector<32x16xf32> to vector<32x16xbf16>
    %c0_35 = arith.constant 0 : index
    %c0_36 = arith.constant 0 : index
    %442 = vector.load %arg5[%c0_35, %c0_36] : memref<33x32xf32, #tpu.memory_space<vmem>>, vector<16x32xf32>
    %443 = arith.truncf %442 : vector<16x32xf32> to vector<16x32xbf16>
    %cst_37 = arith.constant dense<0.000000e+00> : vector<32x32xf32>
    %444 = tpu.matmul %441, %443, %cst_37 {dimension_numbers = #tpu.dot_dimension_numbers<[1], [0], [0], [1], [0, 0, 1, 1], [], []>} : vector<32x16xbf16>, vector<16x32xbf16>, vector<32x32xf32> -> vector<32x32xf32>
    %445 = arith.addf %419, %444 : vector<32x32xf32>
    %446 = vector.extract_strided_slice %5 {offsets = [0, 0, 16], sizes = [2, 16, 16], strides = [1, 1, 1]} : vector<2x16x96xf32> to vector<2x16x16xf32>
    %447 = arith.truncf %446 : vector<2x16x16xf32> to vector<2x16x16xbf16>
    %448 = vector.extract_strided_slice %5 {offsets = [0, 0, 48], sizes = [2, 16, 16], strides = [1, 1, 1]} : vector<2x16x96xf32> to vector<2x16x16xf32>
    %449 = arith.truncf %448 : vector<2x16x16xf32> to vector<2x16x16xbf16>
    %450 = vector.extract_strided_slice %5 {offsets = [0, 0, 80], sizes = [2, 16, 16], strides = [1, 1, 1]} : vector<2x16x96xf32> to vector<2x16x16xf32>
    %451 = arith.truncf %450 : vector<2x16x16xf32> to vector<2x16x16xbf16>
    "tpu.trace_start"() <{level = 10 : i32, message = "mqd,mkd->mqk"}> : () -> ()
    %cst_38 = arith.constant dense<0.000000e+00> : vector<2x16x16xf32>
    %452 = tpu.matmul %447, %449, %cst_38 {dimension_numbers = #tpu.dot_dimension_numbers<[2], [2], [1], [1], [0, 0, 0, 1, 1, 1], [0], [0]>} : vector<2x16x16xbf16>, vector<2x16x16xbf16>, vector<2x16x16xf32> -> vector<2x16x16xf32>
    "tpu.trace_stop"() : () -> ()
    %453 = arith.addf %452, %416 : vector<2x16x16xf32>
    %cst_39 = arith.constant dense<0xFF800000> : vector<2x16xf32>
    %454 = vector.multi_reduction <maximumf>, %453, %cst_39 [2] : vector<2x16x16xf32> to vector<2x16xf32>
    %455 = vector.shape_cast %454 : vector<2x16xf32> to vector<2x16x1xf32>
    %456 = vector.broadcast %455 : vector<2x16x1xf32> to vector<2x16x16xf32>
    %457 = arith.subf %453, %456 : vector<2x16x16xf32>
    %458 = math.exp %457 : vector<2x16x16xf32>
    %cst_40 = arith.constant dense<0.000000e+00> : vector<2x16xf32>
    %459 = vector.multi_reduction <add>, %458, %cst_40 [2] : vector<2x16x16xf32> to vector<2x16xf32>
    %460 = vector.shape_cast %459 : vector<2x16xf32> to vector<2x16x1xf32>
    %461 = tpu.reciprocal %460 : vector<2x16x1xf32> -> vector<2x16x1xf32>
    %462 = vector.broadcast %461 : vector<2x16x1xf32> to vector<2x16x16xf32>
    %463 = arith.mulf %458, %462 : vector<2x16x16xf32>
    %464 = arith.truncf %463 : vector<2x16x16xf32> to vector<2x16x16xbf16>
    "tpu.trace_start"() <{level = 10 : i32, message = "mqk,mkd->mqd"}> : () -> ()
    %cst_41 = arith.constant dense<0.000000e+00> : vector<2x16x16xf32>
    %465 = tpu.matmul %464, %451, %cst_41 {dimension_numbers = #tpu.dot_dimension_numbers<[2], [1], [1], [2], [0, 0, 0, 1, 1, 2], [0], [0]>} : vector<2x16x16xbf16>, vector<2x16x16xbf16>, vector<2x16x16xf32> -> vector<2x16x16xf32>
    "tpu.trace_stop"() : () -> ()
    %466 = vector.shape_cast %465 : vector<2x16x16xf32> to vector<32x16xf32>
    %467 = arith.truncf %466 : vector<32x16xf32> to vector<32x16xbf16>
    %c16_42 = arith.constant 16 : index
    %c0_43 = arith.constant 0 : index
    %468 = vector.load %arg5[%c16_42, %c0_43] : memref<33x32xf32, #tpu.memory_space<vmem>>, vector<16x32xf32>
    %469 = arith.truncf %468 : vector<16x32xf32> to vector<16x32xbf16>
    %cst_44 = arith.constant dense<0.000000e+00> : vector<32x32xf32>
    %470 = tpu.matmul %467, %469, %cst_44 {dimension_numbers = #tpu.dot_dimension_numbers<[1], [0], [0], [1], [0, 0, 1, 1], [], []>} : vector<32x16xbf16>, vector<16x32xbf16>, vector<32x32xf32> -> vector<32x32xf32>
    %471 = arith.addf %445, %470 : vector<32x32xf32>
    %c0_45 = arith.constant 0 : index
    %c0_46 = arith.constant 0 : index
    %472 = vector.load %arg7[%c0_45, %c0_46] : memref<32x32xf32, #tpu.memory_space<vmem>>, vector<32x32xf32>
    tpu.vector_store %arg7[%c0_45, %c0_46], %471 {strides = array<i32>} : memref<32x32xf32, #tpu.memory_space<vmem>>, vector<32x32xf32>,
    return
  }
  func.func @transform_0(%arg0: i32) -> (i32, i32) {
    %c0_i32 = arith.constant 0 : i32
    %c0_i32_0 = arith.constant 0 : i32
    %c0_i32_1 = arith.constant 0 : i32
    return %c0_i32, %c0_i32_0 : i32, i32
  }
  func.func @transform_1(%arg0: i32) -> (i32, i32, i32) {
    %c0_i32 = arith.constant 0 : i32
    %c0_i32_0 = arith.constant 0 : i32
    %c0_i32_1 = arith.constant 0 : i32
    %c0_i32_2 = arith.constant 0 : i32
    return %c0_i32, %c0_i32_0, %c0_i32_1 : i32, i32, i32
  }
  func.func @transform_2(%arg0: i32) -> (i32, i32, i32) {
    %c0_i32 = arith.constant 0 : i32
    %c0_i32_0 = arith.constant 0 : i32
    %c0_i32_1 = arith.constant 0 : i32
    %c0_i32_2 = arith.constant 0 : i32
    return %c0_i32, %c0_i32_0, %c0_i32_1 : i32, i32, i32
  }
  func.func @transform_3(%arg0: i32) -> (i32, i32) {
    %c0_i32 = arith.constant 0 : i32
    %c0_i32_0 = arith.constant 0 : i32
    %c0_i32_1 = arith.constant 0 : i32
    return %c0_i32, %c0_i32_0 : i32, i32
  }
  func.func @transform_4(%arg0: i32) -> (i32, i32) {
    %c0_i32 = arith.constant 0 : i32
    %c0_i32_0 = arith.constant 0 : i32
    %c0_i32_1 = arith.constant 0 : i32
    return %c0_i32, %c0_i32_0 : i32, i32
  }
  func.func @transform_5(%arg0: i32) -> i32 {
    %c0_i32 = arith.constant 0 : i32
    %c0_i32_0 = arith.constant 0 : i32
    return %c0_i32 : i32
  }
  func.func @transform_6(%arg0: i32) -> (i32, i32) {
    %c0_i32 = arith.constant 0 : i32
    %c0_i32_0 = arith.constant 0 : i32
    %c0_i32_1 = arith.constant 0 : i32
    return %c0_i32, %c0_i32_0 : i32, i32
  }
}

</mosaic_0001>

<bundles_post_ra>
// kernel: tpu_custom_call.1
= control target key start
LH: loop header
LB: loop body
LE: loop exit
PB: predicated region body
PF: predicated region fallthrough
CT: control target
= control target key end

     0   :  { %11 = vsyncpa [#allocation3], 0  ;;  %s3604_s0 = inlined_call_operand.vmem [shape: f32[32,32], index: 0, kind: input, shape index: {}]   ;;  %s3605_s1 = inlined_call_operand.vmem [shape: f32[2,2,16], index: 1, kind: input, shape index: {}]   ;;  %s3606_s2 = inlined_call_operand.vmem [shape: f32[2,16,16], index: 2, kind: input, shape index: {}]   ;;  %s3607_s3 = inlined_call_operand.hbm [shape: f32[32,96], index: 3, kind: input, shape index: {}]   ;;  %s3608_s4 = inlined_call_operand.vmem [shape: f32[33,32], index: 4, kind: input, shape index: {}]   ;;  %s3609_s5 = inlined_call_operand.vmem [shape: f32[82], index: 5, kind: input, shape index: {}]   ;;  %s3610_s6 = inlined_call_operand.hbm [shape: f32[32,32], index: 6, kind: output, shape index: {}]  }
   0x1   :  { %12 = vsyncpa [#allocation5], 0 }
   0x2   :  { %13 = vsyncpa [#allocation4], 0  ;;  %s2573_s21 = smov [#allocation2]   ;;  %s40_s25 = sshll.u32 %s3609_s5, 4  ;;  %s41_s25 = int_to_ptr.vmem [resolvable:$true] %s40_s25 }
   0x3   :  { %s25_s22 = sshll.u32 %s2573_s21, 4  ;;  %s2511_s28 = scalar_lea.hbm %s3607_s3, 512  ;;  %s26_s22 = int_to_ptr.vmem [resolvable:$true] %s25_s22 }
   0x4   :  { %p2512_p0 = scmp.ne.s32.totalorder %s3607_s3, %s2511_s28  ;;  %p2515_p1 = scmp.lt.u32.totalorder %s2511_s28, %s3607_s3 }
   0x6   :  { %p2517_p2 = pnand %p2515_p1, %p2512_p0 }
   0x8   :  { %2520 = shalt.err (!%p2517_p2)
}
   0x9   :  { %s2521_s9 = scalar_lea.vmem %s26_s22, 512  ;;  %p2526_p4 = scmp.lt.s32.totalorder %s26_s22, %s26_s22 }
   0xa   :  { %p2522_p3 = scmp.ne.s32.totalorder %s26_s22, %s2521_s9  ;;  %p2527_p5 = scmp.lt.s32.totalorder %s2521_s9, %s2521_s9 }
   0xc   :  { %p2528_p6 = por %p2527_p5, %p2526_p4 }
   0xe   :  { %p2529_p7 = pnand %p2528_p6, %p2522_p3 }
  0x10   :  { %2532 = shalt.err (!%p2529_p7)
}
  0x11   :  { %s2574_s5 = smov 128   ;;  %s2575_s10 = smov 8  }
  0x12   :  { %31 = dma.hbm_to_vmem [thread:$0]  %s3607_s3, 512, %s26_s22, [#allocation3], %s2574_s5, %s2574_s5, %s2575_s10  }
  0x13   :  { %s2533_s13 = scalar_lea.vmem %s41_s25, 16  ;;  %p2538_p9 = scmp.lt.s32.totalorder %s41_s25, %s41_s25 }
  0x14   :  { %p2534_p8 = scmp.ne.s32.totalorder %s41_s25, %s2533_s13  ;;  %p2539_p10 = scmp.lt.s32.totalorder %s2533_s13, %s2533_s13 }
  0x16   :  { %p2540_p11 = por %p2539_p10, %p2538_p9 }
  0x18   :  { %p2541_p12 = pnand %p2540_p11, %p2534_p8 }
  0x1a   :  { %2544 = shalt.err (!%p2541_p12)
}
  0x1b   :  { %s2576_s14 = smov [#allocation6]  }
  0x1c   :  { %43 = dma.vmem_to_smem %s41_s25, 16, %s2576_s14, [#allocation5]  }
  0x1d   :  { %2567 = dma.done.wait [#allocation3], 512  }
  0x1e   :  { %2568 = vsyncadd [#allocation3], 4294966784 }
  0x1f   :  { %2569 = dma.done.wait [#allocation5], 16  }
  0x20   :  { %2570 = vsyncadd [#allocation5], 4294967280 }
  0x21   :  { %50 = sfence }
  0x22   :  { %v58_v0 = vld [vmem:[#allocation2] sm:$0xff]  ;;  %v59_v1 = vld [vmem:[#allocation2 + $0x8] sm:$0xff]  ;;  %v60_v2 = vld [vmem:[#allocation2 + $0x10] sm:$0xff]  ;;  %vm64_vm0 = vcmask 261120   ;;  %s139_s22 = sld [smem:[#allocation6]]  ;;  %v149_v18 = vlaneseq  ;;  %s2277_s29 = sld [smem:[#allocation6 + $0x11]] }
  0x23   :  { %v62_v3 = vpack.c.bf16 %v59_v1, %v58_v0  ;;  %v61_v4 = vld [vmem:[#allocation2 + $0x18] sm:$0xff]  ;;  %v52_v5 = vld [vmem:[%s3604_s0] sm:$0xff]  ;;  %v53_v6 = vld [vmem:[%s3604_s0 + $0x8] sm:$0xff]  ;;  %s2272_s23 = sld [smem:[#allocation6 + $0x10]]  ;;  %s2281_s30 = sld [smem:[#allocation6 + $0x2]]  ;;  %vm2579_vm1 = vmmov 0  }
  0x24   :  { %v63_v7 = vpack.c.bf16 %v61_v4, %v60_v2  ;;  %v56_v8 = vpack.c.bf16 %v53_v6, %v52_v5  ;;  %v54_v9 = vld [vmem:[%s3604_s0 + $0x10] sm:$0xff]  ;;  %v55_v10 = vld [vmem:[%s3604_s0 + $0x18] sm:$0xff]  ;;  %s2273_s24 = sld [smem:[#allocation6 + $0x20]]  ;;  %v2656_v12 = vld [vmem:[%s3605_s1] sm:$0x3]  ;;  %v2667_v20 = vshrl.u32 %v149_v18, 7 }
  0x25   :  { %2390 = vmatprep.subr.bf16.mxu0 %v62_v3  ;;  %v57_v11 = vpack.c.bf16 %v55_v10, %v54_v9  ;;  %v2661_v13 = vld [vmem:[%s3605_s1 + $0x2] sm:$0x3]  ;;  %s2276_s0 = sld [smem:[#allocation6 + $0x1]]  ;;  %s2282_s7 = sld [smem:[#allocation6 + $0x12]]  ;;  %vm1637_vm2 = vcmask 130048  }
  0x26   :  { %2391 = vmatpush3.bf16.msra.mxu0 %v62_v3  ;;  %2394 = vmatprep.mubr.msk.bf16.mxu0 %vm64_vm0, %v56_v8  ;;  %v2671_v23 = vsub.s32 0, %v2667_v20  ;;  %s2278_s1 = sld [smem:[#allocation6 + $0x21]]  ;;  %v2675_v27 = vsub.s32 1, %v2667_v20  ;;  %s2283_s8 = sld [smem:[#allocation6 + $0x22]] }
  0x27   :  { %2392 = vmatprep.subr.bf16.mxu0 %v63_v7  ;;  %s2286_s9 = sld [smem:[#allocation6 + $0x3]]  ;;  %s2291_s13 = sld [smem:[#allocation6 + $0x4]] }
  0x28   :  { %v140_v14 = vstv %s139_s22  ;;  %v236_v26 = vstv %s2277_s29  ;;  %s2287_s11 = sld [smem:[#allocation6 + $0x13]]  ;;  %s2292_s14 = sld [smem:[#allocation6 + $0x14]] }
  0x29   :  { %v143_v15 = vstv %s2272_s23  ;;  %v141_v16 = vmul.f32 %v140_v14, %v2656_v12  ;;  %v237_v29 = vmul.f32 %v2661_v13, %v236_v26  ;;  %v326_v34 = vstv %s2281_s30  ;;  %s2288_s12 = sld [smem:[#allocation6 + $0x23]]  ;;  %s2293_s3 = sld [smem:[#allocation6 + $0x24]] }
  0x2a   :  { %2393 = vmatpush3.bf16.msra.mxu0 %v63_v7  ;;  %v144_v17 = vmul.f32 %v2661_v13, %v143_v15  ;;  %v147_v21 = vstv %s2273_s24  ;;  %v327_v37 = vmul.f32 %v326_v34, %v2656_v12  ;;  %s2296_s15 = sld [smem:[#allocation6 + $0x5]]  ;;  %s2301_s18 = sld [smem:[#allocation6 + $0x6]] }
  0x2b   :  { %v233_v25 = vstv %s2276_s0  ;;  %v329_v35 = vstv %s2282_s7  ;;  %s2297_s16 = sld [smem:[#allocation6 + $0x15]]  ;;  %s2302_s19 = sld [smem:[#allocation6 + $0x16]] }
  0x2c   :  { %v2665_v19 = vadd.f32 %v144_v17, %v141_v16  ;;  %v234_v28 = vmul.f32 %v233_v25, %v2656_v12  ;;  %v240_v31 = vstv %s2278_s1  ;;  %v330_v38 = vmul.f32 %v2661_v13, %v329_v35  ;;  %s2298_s17 = sld [smem:[#allocation6 + $0x25]]  ;;  %s2303_s20 = sld [smem:[#allocation6 + $0x26]] }
  0x2d   :  { %2395 = vmatmul.mubr.msk.bf16.vlgmr.msra.gmra.mrb[0].mxu0 %vm64_vm0, %v57_v11  ;;  %v333_v40 = vstv %s2283_s8  ;;  %v419_v43 = vstv %s2286_s9  ;;  %v512_v52 = vstv %s2291_s13  ;;  %s2306_s21 = sld [smem:[#allocation6 + $0x7]]  ;;  %s2311_s24 = sld [smem:[#allocation6 + $0x8]] }
  0x2e   :  { %v148_v22 = vadd.f32 %v147_v21, %v2665_v19  ;;  %v2679_v30 = vadd.f32 %v237_v29, %v234_v28  ;;  %v2692_v39 = vadd.f32 %v330_v38, %v327_v37  ;;  %v422_v44 = vstv %s2287_s11  ;;  %s2307_s22 = sld [smem:[#allocation6 + $0x17]]  ;;  %s2312_s25 = sld [smem:[#allocation6 + $0x18]] }
  0x2f   :  { %v420_v46 = vmul.f32 %v419_v43, %v2656_v12  ;;  %v423_v47 = vmul.f32 %v2661_v13, %v422_v44  ;;  %v426_v49 = vstv %s2288_s12  ;;  %v515_v53 = vstv %s2292_s14  ;;  %s2308_s23 = sld [smem:[#allocation6 + $0x27]]  ;;  %s2313_s26 = sld [smem:[#allocation6 + $0x28]] }
  0x30   :  { %v152_v24 = vrot.slane %v148_v22, %v2671_v23  ;;  %v2682_v32 = vrot.slane %v148_v22, %v2675_v27  ;;  %v241_v33 = vadd.f32 %v240_v31, %v2679_v30  ;;  %v334_v42 = vadd.f32 %v333_v40, %v2692_v39  ;;  %s2316_s27 = sld [smem:[#allocation6 + $0x9]]  ;;  %s2321_s29 = sld [smem:[#allocation6 + $0xa]] }
  0x31   :  { %v2705_v48 = vadd.f32 %v423_v47, %v420_v46  ;;  %v513_v55 = vmul.f32 %v512_v52, %v2656_v12  ;;  %v516_v56 = vmul.f32 %v2661_v13, %v515_v53  ;;  %v519_v58 = vstv %s2293_s3  ;;  %s2317_s28 = sld [smem:[#allocation6 + $0x19]]  ;;  %s2322_s1 = sld [smem:[#allocation6 + $0x1a]] }
  0x32   :  { %154 = vbcast.lane.b32.xlu1 %v152_v24, 256  ;;  %v2687_v36 = vrot.slane %v241_v33, %v2671_v23  ;;  %v2695_v41 = vrot.slane %v241_v33, %v2675_v27  ;;  %v2700_v45 = vrot.slane %v334_v42, %v2671_v23  ;;  %v2708_v50 = vrot.slane %v334_v42, %v2675_v27  ;;  %s2318_s0 = sld [smem:[#allocation6 + $0x29]]  ;;  %s2323_s30 = sld [smem:[#allocation6 + $0x2a]] }
  0x33   :  { %v427_v51 = vadd.f32 %v426_v49, %v2705_v48  ;;  %v2718_v57 = vadd.f32 %v516_v56, %v513_v55  ;;  %v605_v61 = vstv %s2296_s15  ;;  %v608_v62 = vstv %s2297_s16  ;;  %s2326_s7 = sld [smem:[#allocation6 + $0xb]]  ;;  %s2331_s11 = sld [smem:[#allocation6 + $0xc]] }
  0x34   :  { %v606_v0 = vmul.f32 %v605_v61, %v2656_v12  ;;  %v609_v1 = vmul.f32 %v2661_v13, %v608_v62  ;;  %v612_v3 = vstv %s2298_s17  ;;  %v698_v6 = vstv %s2301_s18  ;;  %s2327_s8 = sld [smem:[#allocation6 + $0x1b]]  ;;  %s2332_s12 = sld [smem:[#allocation6 + $0x1c]] }
  0x35   :  { %v2713_v54 = vrot.slane %v427_v51, %v2671_v23  ;;  %v2721_v59 = vrot.slane %v427_v51, %v2675_v27  ;;  %v520_v60 = vadd.f32 %v519_v58, %v2718_v57  ;;  %v701_v7 = vstv %s2302_s19  ;;  %s2328_s9 = sld [smem:[#allocation6 + $0x2b]]  ;;  %s2333_s13 = sld [smem:[#allocation6 + $0x2c]] }
  0x36   :  { %158 = vbcast.lane.b32.xlu1 %v152_v24, 264  ;;  %v2731_v2 = vadd.f32 %v609_v1, %v606_v0  ;;  %v699_v9 = vmul.f32 %v698_v6, %v2656_v12  ;;  %v702_v10 = vmul.f32 %v2661_v13, %v701_v7  ;;  %v705_v14 = vstv %s2303_s20  ;;  %s2336_s14 = sld [smem:[#allocation6 + $0xd]]  ;;  %s2341_s16 = sld [smem:[#allocation6 + $0xe]] }
  0x37   :  { %v2726_v63 = vrot.slane %v520_v60, %v2671_v23  ;;  %v2734_v4 = vrot.slane %v520_v60, %v2675_v27  ;;  %v791_v17 = vstv %s2306_s21  ;;  %v794_v18 = vstv %s2307_s22  ;;  %s2337_s3 = sld [smem:[#allocation6 + $0x1d]]  ;;  %s2342_s17 = sld [smem:[#allocation6 + $0x1e]] }
  0x38   :  { %v613_v5 = vadd.f32 %v612_v3, %v2731_v2  ;;  %v2744_v11 = vadd.f32 %v702_v10, %v699_v9  ;;  %v792_v22 = vmul.f32 %v791_v17, %v2656_v12  ;;  %v795_v24 = vmul.f32 %v2661_v13, %v794_v18  ;;  %s2338_s15 = sld [smem:[#allocation6 + $0x2d]]  ;;  %s2343_s18 = sld [smem:[#allocation6 + $0x2e]] }
  0x39   :  { %v798_v26 = vstv %s2308_s23  ;;  %v884_v31 = vstv %s2311_s24  ;;  %v887_v33 = vstv %s2312_s25  ;;  %v891_v40 = vstv %s2313_s26  ;;  %s2346_s19 = sld [smem:[#allocation6 + $0xf]]  ;;  %s2271_s22 = sld [smem:[#allocation6 + $0x51]] }
  0x3a   :  { %169 = vbcast.lane.b32.xlu1 %v2682_v32, 264  ;;  %v2739_v8 = vrot.slane %v613_v5, %v2671_v23  ;;  %v2747_v15 = vrot.slane %v613_v5, %v2675_v27  ;;  %v706_v16 = vadd.f32 %v705_v14, %v2744_v11  ;;  %v2757_v25 = vadd.f32 %v795_v24, %v792_v22  ;;  %s2347_s20 = sld [smem:[#allocation6 + $0x1f]]  ;;  %s2270_s23 = sld [smem:[#allocation6 + $0x50]] }
  0x3b   :  { %v885_v35 = vmul.f32 %v884_v31, %v2656_v12  ;;  %v888_v37 = vmul.f32 %v2661_v13, %v887_v33  ;;  %v977_v44 = vstv %s2316_s27  ;;  %v980_v46 = vstv %s2317_s28  ;;  %s2348_s21 = sld [smem:[#allocation6 + $0x2f]]  ;;  %s2882_s26 = sld [smem:[#allocation6 + $0x31]] }
  0x3c   :  { %v2752_v21 = vrot.slane %v706_v16, %v2671_v23  ;;  %v2760_v28 = vrot.slane %v706_v16, %v2675_v27  ;;  %v799_v29 = vadd.f32 %v798_v26, %v2757_v25  ;;  %v978_v49 = vmul.f32 %v977_v44, %v2656_v12  ;;  %s2891_s27 = sld [smem:[#allocation6 + $0x30]]  ;;  %s2580_s28 = smov 96  }
  0x3d   :  { %v2770_v38 = vadd.f32 %v888_v37, %v885_v35  ;;  %v981_v51 = vmul.f32 %v2661_v13, %v980_v46  ;;  %v984_v53 = vstv %s2318_s0  ;;  %v1070_v58 = vstv %s2321_s29  ;;  %s2340_s24 = sld [smem:[#allocation6 + $0x4b]]  ;;  %s2345_s25 = sld [smem:[#allocation6 + $0x4d]] }
  0x3e   :  { %251 = vbcast.lane.b32.xlu1 %v2687_v36, 264  ;;  %v2765_v34 = vrot.slane %v799_v29, %v2671_v23  ;;  %v2773_v42 = vrot.slane %v799_v29, %v2675_v27  ;;  %v1073_v60 = vstv %s2322_s1  ;;  %v1071_v62 = vmul.f32 %v1070_v58, %v2656_v12  ;;  %s2309_s0 = sld [smem:[#allocation6 + $0x3e]]  ;;  %s2314_s29 = sld [smem:[#allocation6 + $0x40]] }
  0x3f   :  { %v892_v43 = vadd.f32 %v891_v40, %v2770_v38  ;;  %v2783_v52 = vadd.f32 %v981_v51, %v978_v49  ;;  %v1074_v0 = vmul.f32 %v2661_v13, %v1073_v60  ;;  %v1077_v3 = vstv %s2323_s30  ;;  %s2319_s1 = sld [smem:[#allocation6 + $0x42]]  ;;  %s2324_s30 = sld [smem:[#allocation6 + $0x44]] }
  0x40   :  { %v1163_v7 = vstv %s2326_s7  ;;  %v1166_v9 = vstv %s2327_s8  ;;  %v1170_v18 = vstv %s2328_s9  ;;  %v1256_v26 = vstv %s2331_s11  ;;  %s2279_s9 = sld [smem:[#allocation6 + $0x32]]  ;;  %s2280_s11 = sld [smem:[#allocation6 + $0x33]] }
  0x41   :  { %v2778_v47 = vrot.slane %v892_v43, %v2671_v23  ;;  %v2786_v55 = vrot.slane %v892_v43, %v2675_v27  ;;  %v985_v56 = vadd.f32 %v984_v53, %v2783_v52  ;;  %v2796_v1 = vadd.f32 %v1074_v0, %v1071_v62  ;;  %s2329_s7 = sld [smem:[#allocation6 + $0x46]]  ;;  %s2334_s8 = sld [smem:[#allocation6 + $0x48]] }
  0x42   :  { %262 = vbcast.lane.b32.xlu1 %v2695_v41, 264  ;;  %v1164_v14 = vmul.f32 %v1163_v7, %v2656_v12  ;;  %v1167_v16 = vmul.f32 %v2661_v13, %v1166_v9  ;;  %v1259_v29 = vstv %s2332_s12  ;;  %v1257_v33 = vmul.f32 %v1256_v26, %v2656_v12  ;;  %s2285_s12 = sld [smem:[#allocation6 + $0x35]] }
  0x43   :  { %v2791_v61 = vrot.slane %v985_v56, %v2671_v23  ;;  %v2799_v5 = vrot.slane %v985_v56, %v2675_v27  ;;  %v1078_v6 = vadd.f32 %v1077_v3, %v2796_v1  ;;  %v1260_v35 = vmul.f32 %v2661_v13, %v1259_v29 }
  0x44   :  { %v2809_v17 = vadd.f32 %v1167_v16, %v1164_v14  ;;  %v1263_v40 = vstv %s2333_s13  ;;  %v1349_v46 = vstv %s2336_s14  ;;  %v1352_v49 = vstv %s2337_s3  ;;  %s2289_s13 = sld [smem:[#allocation6 + $0x36]]  ;;  %s2290_s14 = sld [smem:[#allocation6 + $0x37]] }
  0x45   :  { %v2804_v10 = vrot.slane %v1078_v6, %v2671_v23  ;;  %v2812_v22 = vrot.slane %v1078_v6, %v2675_v27  ;;  %v2822_v37 = vadd.f32 %v1260_v35, %v1257_v33  ;;  %v1350_v53 = vmul.f32 %v1349_v46, %v2656_v12  ;;  %s2294_s3 = sld [smem:[#allocation6 + $0x38]] }
  0x46   :  { %344 = vbcast.lane.b32.xlu1 %v2700_v45, 264  ;;  %v1171_v24 = vadd.f32 %v1170_v18, %v2809_v17  ;;  %v1353_v56 = vmul.f32 %v2661_v13, %v1352_v49  ;;  %v1356_v60 = vstv %s2338_s15  ;;  %v1442_v3 = vstv %s2341_s16  ;;  %s2295_s15 = sld [smem:[#allocation6 + $0x39]]  ;;  %s2300_s16 = sld [smem:[#allocation6 + $0x3b]] }
  0x47   :  { %v1264_v44 = vadd.f32 %v1263_v40, %v2822_v37  ;;  %v1445_v6 = vstv %s2342_s17  ;;  %v1443_v9 = vmul.f32 %v1442_v3, %v2656_v12  ;;  %v1449_v18 = vstv %s2343_s18  ;;  %s2305_s17 = sld [smem:[#allocation6 + $0x3d]]  ;;  %s2310_s18 = sld [smem:[#allocation6 + $0x3f]] }
  0x48   :  { %v2817_v31 = vrot.slane %v1171_v24, %v2671_v23  ;;  %v2825_v43 = vrot.slane %v1171_v24, %v2675_v27  ;;  %v2835_v58 = vadd.f32 %v1353_v56, %v1350_v53  ;;  %v1446_v14 = vmul.f32 %v2661_v13, %v1445_v6 }
  0x49   :  { %v2830_v51 = vrot.slane %v1264_v44, %v2671_v23  ;;  %v2838_v62 = vrot.slane %v1264_v44, %v2675_v27  ;;  %v3611_v29 = vmov 0.0   ;;  %v1535_v33 = vstv %s2346_s19  ;;  %s2315_s19 = sld [smem:[#allocation6 + $0x41]] }
  0x4a   :  { %355 = vbcast.lane.b32.xlu1 %v2708_v50, 264  ;;  %3665 = vst [vmem:[#allocation12_spill] sm:$0xff] %v2835_v58  ;;  %v1357_v0 = vadd.f32 %v1356_v60, %v2835_v58  ;;  %v2848_v16 = vadd.f32 %v1446_v14, %v1443_v9  ;;  %2398 = vmatprep.subr.bf16.mxu1 %v3611_v29  ;;  %v1538_v35 = vstv %s2347_s20  ;;  %v2578_v53 = vmov 1966171168   ;;  %s2320_s20 = sld [smem:[#allocation6 + $0x43]] }
  0x4b   :  { %3664 = vst [vmem:[#allocation11_spill] sm:$0xff] %v2830_v51  ;;  %3666 = vst [vmem:[#allocation13_spill] sm:$0xff] %v2838_v62  ;;  %2404 = vmatprep.subr.bf16.mxu0 %v3611_v29  ;;  %v1536_v46 = vmul.f32 %v1535_v33, %v2656_v12  ;;  %v1539_v49 = vmul.f32 %v2661_v13, %v1538_v35  ;;  %v173_v56 = vunpack.c.l.s4 %v2578_v53  ;;  %2400 = vmatprep.mubr.msk.bf16.mxu1 %vm2579_vm1, %v3611_v29 }
  0x4c   :  { %v2843_v7 = vrot.slane %v1357_v0, %v2671_v23  ;;  %3668 = vst [vmem:[#allocation15_spill] sm:$0xff] %v2848_v16  ;;  %v2851_v24 = vrot.slane %v1357_v0, %v2675_v27  ;;  %v1450_v26 = vadd.f32 %v1449_v18, %v2848_v16  ;;  %v1542_v0 = vstv %s2348_s21  ;;  %2406 = vmatprep.mubr.msk.bf16.mxu0 %vm2579_vm1, %v3611_v29  ;;  %v2879_v18 = vld [vmem:[%s3606_s2 + $0x10] sm:$0xff]  ;;  %s2325_s21 = sld [smem:[#allocation6 + $0x45]] }
  0x4d   :  { %v2863_v60 = vadd.f32 %v1539_v49, %v1536_v46  ;;  %v174_v3 = vunpack.c.0.s8 %v173_v56  ;;  %3673 = vst [vmem:[#allocation20_spill] sm:$0xff] %v2879_v18  ;;  %v134_v35 = vstv %s2271_s22  ;;  %v2953_v58 = vstv %s2280_s11  ;;  %s2330_s22 = sld [smem:[#allocation6 + $0x47]]  ;;  %s2344_s11 = sld [smem:[#allocation6 + $0x4c]] }
  0x4e   :  { %437 = vbcast.lane.b32.xlu1 %v2713_v54, 264  ;;  %3667 = vst [vmem:[#allocation14_spill] sm:$0xff] %v2843_v7  ;;  %3669 = vst [vmem:[#allocation16_spill] sm:$0xff] %v2851_v24  ;;  %v2858_v40 = vrot.slane %v1450_v26, %v2671_v23  ;;  %v2866_v6 = vrot.slane %v1450_v26, %v2675_v27 }
  0x4f   :  { %3671 = vst [vmem:[#allocation18_spill] sm:$0xff] %v2863_v60  ;;  %v1543_v14 = vadd.f32 %v1542_v0, %v2863_v60  ;;  %v2874_v13 = vsub.s32 %v174_v3, %v2667_v20  ;;  %v2894_v0 = vadd.f32 %v134_v35, %v2879_v18 }
  0x50   :  { %3670 = vst [vmem:[#allocation17_spill] sm:$0xff] %v2858_v40  ;;  %3672 = vst [vmem:[#allocation19_spill] sm:$0xff] %v2866_v6 }
  0x51   :  { %v178_v46 = vrot.slane %v2665_v19, %v2874_v13  ;;  %v2887_v49 = vrot.slane %v1543_v14, %v2671_v23  ;;  %3676 = vst [vmem:[#allocation23_spill] sm:$0xff] %v2894_v0  ;;  %v2904_v19 = vld [vmem:[%s3606_s2] sm:$0xff]  ;;  %v126_v0 = vld [vmem:[%s3606_s2 + $0x18] sm:$0xff]  ;;  %v271_v18 = vrot.slane %v2679_v30, %v2874_v13 }
  0x52   :  { %448 = vbcast.lane.b32.xlu1 %v2721_v59, 264  ;;  %3678 = vst [vmem:[#allocation25_spill] sm:$0xff] %v2904_v19 }
  0x53   :  { %3674 = vst [vmem:[#allocation21_spill] sm:$0xff] %v2887_v49  ;;  %v186_v29 = vrot.slane %v178_v46, %v2874_v13  ;;  %v272_v60 = vcombine.high %v271_v18, %v271_v18 }
  0x56   :  { %530 = vbcast.lane.b32.xlu1 %v2726_v63, 264 }
  0x5a   :  { %541 = vbcast.lane.b32.xlu1 %v2734_v4, 264 }
  0x5e   :  { %623 = vbcast.lane.b32.xlu1 %v2739_v8, 264 }
  0x62   :  { %634 = vbcast.lane.b32.xlu1 %v2747_v15, 264 }
  0x66   :  { %716 = vbcast.lane.b32.xlu1 %v2752_v21, 264 }
  0x6a   :  { %727 = vbcast.lane.b32.xlu1 %v2760_v28, 264 }
  0x6e   :  { %809 = vbcast.lane.b32.xlu1 %v2765_v34, 264 }
  0x72   :  { %820 = vbcast.lane.b32.xlu1 %v2773_v42, 264 }
  0x76   :  { %902 = vbcast.lane.b32.xlu1 %v2778_v47, 264 }
  0x7a   :  { %913 = vbcast.lane.b32.xlu1 %v2786_v55, 264 }
  0x7e   :  { %995 = vbcast.lane.b32.xlu1 %v2791_v61, 264 }
  0x82   :  { %1006 = vbcast.lane.b32.xlu1 %v2799_v5, 264 }
  0x86   :  { %1088 = vbcast.lane.b32.xlu1 %v2804_v10, 264 }
  0x8a   :  { %1099 = vbcast.lane.b32.xlu1 %v2812_v22, 264 }
  0x8e   :  { %1181 = vbcast.lane.b32.xlu1 %v2817_v31, 264 }
  0x92   :  { %1192 = vbcast.lane.b32.xlu1 %v2825_v43, 264 }
  0x96   :  { %1274 = vbcast.lane.b32.xlu1 %v2830_v51, 264  ;;  %v286_v51 = vrot.slane %v272_v60, %v2874_v13 }
  0x9a   :  { %1285 = vbcast.lane.b32.xlu1 %v2838_v62, 264 }
  0x9e   :  { %1367 = vbcast.lane.b32.xlu1 %v2843_v7, 264  ;;  %v2935_v7 = vstv %s2891_s27  ;;  %s2299_s27 = sld [smem:[#allocation6 + $0x3a]] }
  0xa2   :  { %1378 = vbcast.lane.b32.xlu1 %v2851_v24, 264  ;;  %v279_v24 = vrot.slane %v271_v18, %v2874_v13 }
  0xa4   :  { %v155_v44 = vpop.permute.xlu1 %154 }
  0xa6   :  { %1460 = vbcast.lane.b32.xlu1 %v2858_v40, 264  ;;  %v138_v40 = vadd.f32 %v134_v35, %v126_v0 }
  0xa8   :  { %v159_v9 = vpop.permute.xlu1 %158 }
  0xaa   :  { %1471 = vbcast.lane.b32.xlu1 %v2866_v6, 264  ;;  %v179_v6 = vcombine.high %v178_v46, %v178_v46  ;;  %v124_v46 = vld [vmem:[%s3606_s2 + $0x8] sm:$0xff]  ;;  %s2284_s2 = sld [smem:[#allocation6 + $0x34]] }
  0xac   :  { %v170_v20 = vpop.permute.xlu1 %169 }
  0xae   :  { %1553 = vbcast.lane.b32.xlu1 %v2887_v49, 264  ;;  %v2919_v49 = vstv %s2270_s23  ;;  %s2335_s23 = sld [smem:[#allocation6 + $0x49]] }
 0x100   :  { %v2396_v12 = vpop.f32.mrb[0].mxu0 }
 0x101   :  { %v105_v26 = vpop.f32.mrb[1].mxu0 }
 0x102   :  { %v2397_v33 = vpop.f32.mrb[2].mxu0 }
 0x103   :  { %v2889_v53 = vpack.c.bf16 %v2397_v33, %v2396_v12  ;;  %v108_v56 = vpop.f32.mrb[3].mxu0  ;;  %v197_v12 = vrot.slane %v186_v29, %v2671_v23  ;;  %v193_v33 = vrot.slane %v179_v6, %v2874_v13 }
 0x104   :  { %v2896_v3 = vpack.c.bf16 %v108_v56, %v105_v26  ;;  %v2909_v26 = vrot.slane %v1543_v14, %v2675_v27  ;;  %v252_v56 = vpop.permute.xlu1 %251  ;;  %v135_v14 = vadd.f32 %v134_v35, %v2904_v19  ;;  %v2939_v19 = vrot.slane %v279_v24, %v2671_v23 }
 0x105   :  { %3675 = vst [vmem:[#allocation22_spill] sm:$0xff] %v2889_v53  ;;  %v204_v29 = vsub.f32 %v155_v44, %v197_v12  ;;  %v205_v6 = vsub.f32 %v159_v9, %v197_v12  ;;  %v2922_v27 = vrot.slane %v193_v33, %v2671_v23  ;;  %v136_v44 = vadd.f32 %v134_v35, %v124_v46 }
 0x106   :  { %3677 = vst [vmem:[#allocation24_spill] sm:$0xff] %v2896_v3  ;;  %1635 = vrot.lane.b32.xlu0 %v2896_v3, %s2580_s28  ;;  %3679 = vst [vmem:[#allocation26_spill] sm:$0xff] %v2909_v26  ;;  %1564 = vbcast.lane.b32.xlu1 %v2909_v26, 264  ;;  %v2927_v3 = vstv %s2882_s26  ;;  %v130_v26 = vadd.f32 %v2919_v49, %v124_v46  ;;  %s2350_s26 = sld [smem:[#allocation6 + $0x4f]] }
 0x107   :  { %3680 = vst [vmem:[#allocation27_spill] sm:$0xff] %v2922_v27  ;;  %v2931_v30 = vmax.f32 %v204_v29, 0.0  ;;  %v209_v9 = vmax.f32 %v205_v6, 0.0  ;;  %v207_v12 = vsub.f32 %v170_v20, %v2922_v27  ;;  %v298_v6 = vsub.f32 %v252_v56, %v2939_v19 }
 0x108   :  { %v263_v33 = vpop.permute.xlu1 %262 }
 0x109   :  { %3681 = vst [vmem:[#allocation28_spill] sm:$0xff] %v2931_v30  ;;  %v224_v62 = vmul.f32 %v2927_v3, %v2931_v30  ;;  %v225_v29 = vmul.f32 %v2927_v3, %v209_v9  ;;  %v211_v35 = vmax.f32 %v207_v12, 0.0  ;;  %v302_v18 = vmax.f32 %v298_v6, 0.0 }
 0x10a   :  { %1686 = vrot.lane.b32.xlu0 %v2889_v53, %s2580_s28  ;;  %v215_v53 = vmul.f32 %v2935_v7, %v209_v9  ;;  %v2951_v30 = vstv %s2279_s9  ;;  %v364_v9 = vrot.slane %v2692_v39, %v2874_v13  ;;  %s2304_s28 = sld [smem:[#allocation6 + $0x3c]]  ;;  %s2339_s9 = sld [smem:[#allocation6 + $0x4a]] }
 0x10b   :  { %v2947_v20 = vadd.f32 %v224_v62, %v135_v14  ;;  %v229_v27 = vadd.f32 %v225_v29, %v136_v44  ;;  %v227_v24 = vmul.f32 %v2927_v3, %v211_v35  ;;  %v318_v62 = vmul.f32 %v2953_v58, %v302_v18 }
 0x10c   :  { %v345_v46 = vpop.permute.xlu1 %344  ;;  %v219_v16 = vadd.f32 %v215_v53, %v130_v26  ;;  %v132_v53 = vadd.f32 %v2919_v49, %v126_v0  ;;  %v217_v60 = vmul.f32 %v2935_v7, %v211_v35  ;;  %v2963_v26 = vrot.slane %v286_v51, %v2671_v23 }
 0x10d   :  { %v231_v56 = vadd.f32 %v227_v24, %v138_v40  ;;  %v372_v14 = vrot.slane %v364_v9, %v2874_v13  ;;  %v322_v40 = vadd.f32 %v318_v62, %v229_v27  ;;  %v365_v12 = vcombine.high %v364_v9, %v364_v9 }
 0x10e   :  { %165 = vbcast.lane.b32.xlu0 %v2682_v32, 256  ;;  %v308_v32 = vmul.f32 %v2951_v30, %v302_v18  ;;  %v300_v29 = vsub.f32 %v263_v33, %v2963_v26  ;;  %v221_v0 = vadd.f32 %v217_v60, %v132_v53  ;;  %v2982_v62 = vstv %s2285_s12  ;;  %s2581_s12 = smov 64  }
 0x10f   :  { %v2968_v6 = vrot.slane %v372_v14, %v2671_v23 }
 0x110   :  { %v356_v44 = vpop.permute.xlu1 %355  ;;  %v312_v39 = vadd.f32 %v308_v32, %v219_v16  ;;  %v304_v35 = vmax.f32 %v300_v29, 0.0  ;;  %v457_v16 = vrot.slane %v2705_v48, %v2874_v13  ;;  %v2980_v32 = vstv %s2284_s2  ;;  %s2349_s2 = sld [smem:[#allocation6 + $0x4e]] }
 0x111   :  { %3682 = vst [vmem:[#allocation29_spill] sm:$0xff] %v2968_v6  ;;  %v391_v51 = vsub.f32 %v345_v46, %v2968_v6 }
 0x112   :  { %247 = vbcast.lane.b32.xlu0 %v2687_v36, 256  ;;  %v379_v36 = vrot.slane %v365_v12, %v2874_v13  ;;  %v310_v27 = vmul.f32 %v2951_v30, %v304_v35  ;;  %v320_v33 = vmul.f32 %v2953_v58, %v304_v35  ;;  %v465_v46 = vrot.slane %v457_v16, %v2874_v13 }
 0x113   :  { %v395_v9 = vmax.f32 %v391_v51, 0.0 }
 0x114   :  { %v438_v24 = vpop.permute.xlu1 %437  ;;  %v2974_v18 = vrot.slane %v379_v36, %v2671_v23  ;;  %v314_v53 = vadd.f32 %v310_v27, %v221_v0  ;;  %v324_v60 = vadd.f32 %v320_v33, %v231_v56  ;;  %v458_v36 = vcombine.high %v457_v16, %v457_v16 }
 0x115   :  { %v401_v48 = vmul.f32 %v2980_v32, %v395_v9  ;;  %v411_v14 = vmul.f32 %v2982_v62, %v395_v9  ;;  %v2990_v6 = vrot.slane %v465_v46, %v2671_v23  ;;  %v3002_v9 = vstv %s2289_s13  ;;  %s2582_s13 = smov 80  }
 0x116   :  { %258 = vbcast.lane.b32.xlu0 %v2695_v41, 256  ;;  %3683 = vst [vmem:[#allocation30_spill] sm:$0xff] %v2974_v18  ;;  %v393_v41 = vsub.f32 %v356_v44, %v2974_v18  ;;  %v472_v56 = vrot.slane %v458_v36, %v2874_v13 }
 0x117   :  { %v405_v35 = vadd.f32 %v401_v48, %v312_v39  ;;  %v415_v51 = vadd.f32 %v411_v14, %v322_v40  ;;  %v550_v39 = vrot.slane %v2718_v57, %v2874_v13 }
 0x118   :  { %v449_v12 = vpop.permute.xlu1 %448  ;;  %v397_v29 = vmax.f32 %v393_v41, 0.0  ;;  %v3000_v16 = vrot.slane %v472_v56, %v2671_v23  ;;  %v3004_v41 = vstv %s2290_s14  ;;  %s2583_s14 = smov 112  }
 0x11a   :  { %340 = vbcast.lane.b32.xlu0 %v2700_v45, 256  ;;  %v403_v44 = vmul.f32 %v2980_v32, %v397_v29  ;;  %v413_v18 = vmul.f32 %v2982_v62, %v397_v29  ;;  %v484_v45 = vsub.f32 %v438_v24, %v2990_v6  ;;  %v486_v57 = vsub.f32 %v449_v12, %v3000_v16 }
 0x11c   :  { %v531_v0 = vpop.permute.xlu1 %530  ;;  %v407_v27 = vadd.f32 %v403_v44, %v314_v53  ;;  %v417_v33 = vadd.f32 %v413_v18, %v324_v60  ;;  %v488_v40 = vmax.f32 %v484_v45, 0.0  ;;  %v551_v60 = vcombine.high %v550_v39, %v550_v39 }
 0x11d   :  { %v490_v29 = vmax.f32 %v486_v57, 0.0 }
 0x11e   :  { %351 = vbcast.lane.b32.xlu0 %v2708_v50, 256  ;;  %v558_v50 = vrot.slane %v550_v39, %v2874_v13  ;;  %v494_v24 = vmul.f32 %v3002_v9, %v488_v40  ;;  %v504_v18 = vmul.f32 %v3004_v41, %v488_v40  ;;  %v565_v44 = vrot.slane %v551_v60, %v2874_v13 }
 0x11f   :  { %v506_v45 = vmul.f32 %v3004_v41, %v490_v29 }
 0x120   :  { %v542_v46 = vpop.permute.xlu1 %541  ;;  %v3012_v53 = vrot.slane %v558_v50, %v2671_v23  ;;  %v498_v48 = vadd.f32 %v494_v24, %v405_v35  ;;  %v508_v14 = vadd.f32 %v504_v18, %v415_v51  ;;  %v3020_v40 = vrot.slane %v565_v44, %v2671_v23 }
 0x121   :  { %v643_v35 = vrot.slane %v2731_v2, %v2874_v13  ;;  %v510_v39 = vadd.f32 %v506_v45, %v417_v33  ;;  %v3024_v50 = vstv %s2294_s3 }
 0x122   :  { %433 = vbcast.lane.b32.xlu0 %v2713_v54, 256  ;;  %v577_v36 = vsub.f32 %v531_v0, %v3012_v53  ;;  %v496_v54 = vmul.f32 %v3002_v9, %v490_v29  ;;  %v3026_v0 = vstv %s2295_s15  ;;  %v579_v18 = vsub.f32 %v542_v46, %v3020_v40 }
 0x123   :  { %v651_v57 = vrot.slane %v643_v35, %v2874_v13 }
 0x124   :  { %v624_v56 = vpop.permute.xlu1 %623  ;;  %v581_v12 = vmax.f32 %v577_v36, 0.0  ;;  %v500_v51 = vadd.f32 %v496_v54, %v407_v27  ;;  %v583_v27 = vmax.f32 %v579_v18, 0.0  ;;  %v644_v36 = vcombine.high %v643_v35, %v643_v35 }
 0x125   :  { %v3036_v33 = vrot.slane %v651_v57, %v2671_v23 }
 0x126   :  { %444 = vbcast.lane.b32.xlu0 %v2721_v59, 256  ;;  %v587_v59 = vmul.f32 %v3024_v50, %v581_v12  ;;  %v597_v24 = vmul.f32 %v3026_v0, %v581_v12  ;;  %v589_v44 = vmul.f32 %v3024_v50, %v583_v27  ;;  %v599_v54 = vmul.f32 %v3026_v0, %v583_v27 }
 0x127   :  { %v670_v46 = vsub.f32 %v624_v56, %v3036_v33  ;;  %v658_v45 = vrot.slane %v644_v36, %v2874_v13 }
 0x128   :  { %v635_v60 = vpop.permute.xlu1 %634  ;;  %v3033_v29 = vadd.f32 %v587_v59, %v498_v48  ;;  %v601_v2 = vadd.f32 %v597_v24, %v508_v14  ;;  %v3043_v12 = vadd.f32 %v589_v44, %v500_v51  ;;  %v603_v48 = vadd.f32 %v599_v54, %v510_v39 }
 0x129   :  { %v736_v14 = vrot.slane %v2744_v11, %v2874_v13  ;;  %v3047_v59 = vmax.f32 %v670_v46, 0.0  ;;  %v3050_v35 = vrot.slane %v658_v45, %v2671_v23  ;;  %v3052_v24 = vstv %s2300_s16 }
 0x12a   :  { %526 = vbcast.lane.b32.xlu0 %v2726_v63, 256  ;;  %3684 = vst [vmem:[#allocation31_spill] sm:$0xff] %v3033_v29  ;;  %3685 = vst [vmem:[#allocation32_spill] sm:$0xff] %v3043_v12 }
 0x12b   :  { %3686 = vst [vmem:[#allocation33_spill] sm:$0xff] %v3047_v59  ;;  %v690_v56 = vmul.f32 %v3052_v24, %v3047_v59  ;;  %v672_v51 = vsub.f32 %v635_v60, %v3050_v35  ;;  %v737_v18 = vcombine.high %v736_v14, %v736_v14 }
 0x12c   :  { %v717_v63 = vpop.permute.xlu1 %716 }
 0x12d   :  { %v694_v57 = vadd.f32 %v690_v56, %v601_v2  ;;  %v3062_v27 = vmax.f32 %v672_v51, 0.0  ;;  %v751_v44 = vrot.slane %v737_v18, %v2874_v13  ;;  %v829_v2 = vrot.slane %v2757_v25, %v2874_v13 }
 0x12e   :  { %537 = vbcast.lane.b32.xlu0 %v2734_v4, 256  ;;  %v744_v4 = vrot.slane %v736_v14, %v2874_v13  ;;  %v3076_v14 = vstv %s2305_s17 }
 0x12f   :  { %3687 = vst [vmem:[#allocation34_spill] sm:$0xff] %v3062_v27  ;;  %v3072_v60 = vrot.slane %v751_v44, %v2671_v23  ;;  %v830_v25 = vcombine.high %v829_v2, %v829_v2 }
 0x130   :  { %v728_v39 = vpop.permute.xlu1 %727  ;;  %v3060_v11 = vrot.slane %v744_v4, %v2671_v23  ;;  %v837_v4 = vrot.slane %v829_v2, %v2874_v13  ;;  %v3100_v2 = vstv %s2310_s18  ;;  %s2584_s18 = smov 48  }
 0x131   :  { %v844_v44 = vrot.slane %v830_v25, %v2874_v13 }
 0x132   :  { %619 = vbcast.lane.b32.xlu0 %v2739_v8, 256  ;;  %v763_v36 = vsub.f32 %v717_v63, %v3060_v11  ;;  %v692_v8 = vmul.f32 %v3052_v24, %v3062_v27 }
 0x134   :  { %v810_v54 = vpop.permute.xlu1 %809  ;;  %v3069_v46 = vmax.f32 %v763_v36, 0.0  ;;  %v696_v45 = vadd.f32 %v692_v8, %v603_v48  ;;  %v3086_v36 = vrot.slane %v837_v4, %v2671_v23 }
 0x136   :  { %630 = vbcast.lane.b32.xlu0 %v2747_v15, 256  ;;  %3688 = vst [vmem:[#allocation35_spill] sm:$0xff] %v3069_v46  ;;  %v783_v63 = vmul.f32 %v3076_v14, %v3069_v46  ;;  %v765_v15 = vsub.f32 %v728_v39, %v3072_v60  ;;  %v856_v39 = vsub.f32 %v810_v54, %v3086_v36 }
 0x138   :  { %v821_v56 = vpop.permute.xlu1 %820  ;;  %v787_v51 = vadd.f32 %v783_v63, %v694_v57  ;;  %v3083_v18 = vmax.f32 %v765_v15, 0.0  ;;  %v3095_v57 = vmax.f32 %v856_v39, 0.0  ;;  %v3098_v63 = vrot.slane %v844_v44, %v2671_v23 }
 0x13a   :  { %712 = vbcast.lane.b32.xlu0 %v2752_v21, 256  ;;  %3689 = vst [vmem:[#allocation36_spill] sm:$0xff] %v3083_v18  ;;  %v785_v48 = vmul.f32 %v3076_v14, %v3083_v18  ;;  %v922_v21 = vrot.slane %v2770_v38, %v2874_v13  ;;  %3690 = vst [vmem:[#allocation37_spill] sm:$0xff] %v3095_v57  ;;  %v858_v54 = vsub.f32 %v821_v56, %v3098_v63 }
 0x13c   :  { %v903_v8 = vpop.permute.xlu1 %902  ;;  %v789_v12 = vadd.f32 %v785_v48, %v696_v45  ;;  %v930_v15 = vrot.slane %v922_v21, %v2874_v13  ;;  %v923_v4 = vcombine.high %v922_v21, %v922_v21  ;;  %v3110_v48 = vmax.f32 %v858_v54, 0.0 }
 0x13e   :  { %723 = vbcast.lane.b32.xlu0 %v2760_v28, 256  ;;  %v876_v28 = vmul.f32 %v3100_v2, %v3095_v57  ;;  %v3108_v38 = vrot.slane %v930_v15, %v2671_v23  ;;  %3691 = vst [vmem:[#allocation38_spill] sm:$0xff] %v3110_v48  ;;  %v937_v44 = vrot.slane %v923_v4, %v2874_v13  ;;  %v3124_v15 = vstv %s2315_s19 }
 0x140   :  { %v914_v45 = vpop.permute.xlu1 %913  ;;  %v880_v25 = vadd.f32 %v876_v28, %v787_v51  ;;  %v949_v39 = vsub.f32 %v903_v8, %v3108_v38  ;;  %v3120_v56 = vrot.slane %v937_v44, %v2671_v23  ;;  %v1015_v51 = vrot.slane %v2783_v52, %v2874_v13 }
 0x142   :  { %805 = vbcast.lane.b32.xlu0 %v2765_v34, 256  ;;  %v878_v34 = vmul.f32 %v3100_v2, %v3110_v48  ;;  %v3117_v18 = vmax.f32 %v949_v39, 0.0  ;;  %v1023_v28 = vrot.slane %v1015_v51, %v2874_v13  ;;  %v1016_v52 = vcombine.high %v1015_v51, %v1015_v51 }
 0x143   :  { %v3148_v51 = vstv %s2320_s20 }
 0x144   :  { %v996_v57 = vpop.permute.xlu1 %995  ;;  %3692 = vst [vmem:[#allocation39_spill] sm:$0xff] %v3117_v18  ;;  %v882_v21 = vadd.f32 %v878_v34, %v789_v12  ;;  %v969_v8 = vmul.f32 %v3124_v15, %v3117_v18  ;;  %v3134_v44 = vrot.slane %v1023_v28, %v2671_v23  ;;  %v1030_v34 = vrot.slane %v1016_v52, %v2874_v13 }
 0x146   :  { %816 = vbcast.lane.b32.xlu0 %v2773_v42, 256  ;;  %v951_v42 = vsub.f32 %v914_v45, %v3120_v56  ;;  %v973_v4 = vadd.f32 %v969_v8, %v880_v25  ;;  %v1042_v45 = vsub.f32 %v996_v57, %v3134_v44  ;;  %v3146_v8 = vrot.slane %v1030_v34, %v2671_v23 }
 0x148   :  { %v1007_v54 = vpop.permute.xlu1 %1006  ;;  %v3131_v39 = vmax.f32 %v951_v42, 0.0  ;;  %v3143_v25 = vmax.f32 %v1042_v45, 0.0 }
 0x149   :  { %v1044_v57 = vsub.f32 %v1007_v54, %v3146_v8 }
 0x14a   :  { %898 = vbcast.lane.b32.xlu0 %v2778_v47, 256  ;;  %3693 = vst [vmem:[#allocation40_spill] sm:$0xff] %v3131_v39  ;;  %v971_v12 = vmul.f32 %v3124_v15, %v3131_v39  ;;  %v1108_v47 = vrot.slane %v2796_v1, %v2874_v13  ;;  %3694 = vst [vmem:[#allocation41_spill] sm:$0xff] %v3143_v25 }
 0x14c   :  { %v1089_v18 = vpop.permute.xlu1 %1088  ;;  %v975_v48 = vadd.f32 %v971_v12, %v882_v21  ;;  %v1116_v42 = vrot.slane %v1108_v47, %v2874_v13  ;;  %v1109_v28 = vcombine.high %v1108_v47, %v1108_v47  ;;  %v3158_v12 = vmax.f32 %v1044_v57, 0.0 }
 0x14e   :  { %909 = vbcast.lane.b32.xlu0 %v2786_v55, 256  ;;  %v1062_v55 = vmul.f32 %v3148_v51, %v3143_v25  ;;  %v3156_v1 = vrot.slane %v1116_v42, %v2671_v23  ;;  %3695 = vst [vmem:[#allocation42_spill] sm:$0xff] %v3158_v12  ;;  %v1123_v34 = vrot.slane %v1109_v28, %v2874_v13  ;;  %v3172_v42 = vstv %s2325_s21 }
 0x150   :  { %v1100_v21 = vpop.permute.xlu1 %1099  ;;  %v1066_v52 = vadd.f32 %v1062_v55, %v973_v4  ;;  %v1135_v45 = vsub.f32 %v1089_v18, %v3156_v1  ;;  %v3168_v54 = vrot.slane %v1123_v34, %v2671_v23  ;;  %v1201_v4 = vrot.slane %v2809_v17, %v2874_v13 }
 0x152   :  { %991 = vbcast.lane.b32.xlu0 %v2791_v61, 256  ;;  %v1064_v61 = vmul.f32 %v3148_v51, %v3158_v12  ;;  %v3165_v39 = vmax.f32 %v1135_v45, 0.0  ;;  %v1209_v55 = vrot.slane %v1201_v4, %v2874_v13  ;;  %v1202_v17 = vcombine.high %v1201_v4, %v1201_v4 }
 0x153   :  { %v3196_v4 = vstv %s2330_s22 }
 0x154   :  { %v1182_v25 = vpop.permute.xlu1 %1181  ;;  %3696 = vst [vmem:[#allocation43_spill] sm:$0xff] %v3165_v39  ;;  %v1068_v47 = vadd.f32 %v1064_v61, %v975_v48  ;;  %v1155_v18 = vmul.f32 %v3172_v42, %v3165_v39  ;;  %v3182_v34 = vrot.slane %v1209_v55, %v2671_v23  ;;  %v1216_v61 = vrot.slane %v1202_v17, %v2874_v13 }
 0x156   :  { %1002 = vbcast.lane.b32.xlu0 %v2799_v5, 256  ;;  %v1137_v5 = vsub.f32 %v1100_v21, %v3168_v54  ;;  %v1159_v28 = vadd.f32 %v1155_v18, %v1066_v52  ;;  %v1228_v21 = vsub.f32 %v1182_v25, %v3182_v34  ;;  %v3194_v18 = vrot.slane %v1216_v61, %v2671_v23 }
 0x158   :  { %v1193_v57 = vpop.permute.xlu1 %1192  ;;  %v3179_v45 = vmax.f32 %v1137_v5, 0.0  ;;  %v3191_v52 = vmax.f32 %v1228_v21, 0.0 }
 0x159   :  { %v1230_v25 = vsub.f32 %v1193_v57, %v3194_v18 }
 0x15a   :  { %1084 = vbcast.lane.b32.xlu0 %v2804_v10, 256  ;;  %3697 = vst [vmem:[#allocation44_spill] sm:$0xff] %v3179_v45  ;;  %v1157_v48 = vmul.f32 %v3172_v42, %v3179_v45  ;;  %v1294_v10 = vrot.slane %v2822_v37, %v2874_v13  ;;  %3698 = vst [vmem:[#allocation45_spill] sm:$0xff] %v3191_v52 }
 0x15c   :  { %v1275_v39 = vpop.permute.xlu1 %1274  ;;  %v1161_v12 = vadd.f32 %v1157_v48, %v1068_v47  ;;  %v1302_v5 = vrot.slane %v1294_v10, %v2874_v13  ;;  %v1295_v55 = vcombine.high %v1294_v10, %v1294_v10  ;;  %v3206_v48 = vmax.f32 %v1230_v25, 0.0  ;;  %v3702_v10 = vld [vmem:[#allocation12_spill] sm:$0xff] }
 0x15e   :  { %1095 = vbcast.lane.b32.xlu0 %v2812_v22, 256  ;;  %v1248_v22 = vmul.f32 %v3196_v4, %v3191_v52  ;;  %v3204_v37 = vrot.slane %v1302_v5, %v2671_v23  ;;  %3699 = vst [vmem:[#allocation46_spill] sm:$0xff] %v3206_v48  ;;  %v1309_v61 = vrot.slane %v1295_v55, %v2874_v13  ;;  %v3704_v55 = vld [vmem:[#allocation11_spill] sm:$0xff] }
 0x160   :  { %v1286_v47 = vpop.permute.xlu1 %1285  ;;  %v1252_v17 = vadd.f32 %v1248_v22, %v1159_v28  ;;  %v1321_v21 = vsub.f32 %v1275_v39, %v3204_v37  ;;  %v3216_v57 = vrot.slane %v1309_v61, %v2671_v23  ;;  %v1387_v28 = vrot.slane %v3702_v10, %v2874_v13 }
 0x161   :  { %v3220_v22 = vstv %s2335_s23 }
 0x162   :  { %1177 = vbcast.lane.b32.xlu0 %v2817_v31, 256  ;;  %v1250_v31 = vmul.f32 %v3196_v4, %v3206_v48  ;;  %v3213_v45 = vmax.f32 %v1321_v21, 0.0  ;;  %3701 = vst [vmem:[#allocation48_spill] sm:$0xff] %v3216_v57  ;;  %3703 = vst [vmem:[#allocation12_spill] sm:$0xff] %v3220_v22  ;;  %v1395_v25 = vrot.slane %v1387_v28, %v2874_v13 }
 0x164   :  { %v1368_v52 = vpop.permute.xlu1 %1367  ;;  %3700 = vst [vmem:[#allocation47_spill] sm:$0xff] %v3213_v45  ;;  %v1254_v5 = vadd.f32 %v1250_v31, %v1161_v12  ;;  %v1341_v39 = vmul.f32 %v3220_v22, %v3213_v45  ;;  %v3230_v46 = vrot.slane %v1395_v25, %v2671_v23  ;;  %v1388_v12 = vcombine.high %v1387_v28, %v1387_v28  ;;  %v3707_v31 = vld [vmem:[#allocation15_spill] sm:$0xff]  ;;  %v3709_v28 = vld [vmem:[#allocation18_spill] sm:$0xff] }
 0x165   :  { %v1480_v10 = vrot.slane %v3707_v31, %v2874_v13  ;;  %v1573_v27 = vrot.slane %v3709_v28, %v2874_v13 }
 0x166   :  { %1188 = vbcast.lane.b32.xlu0 %v2825_v43, 256  ;;  %v1323_v43 = vsub.f32 %v1286_v47, %v3216_v57  ;;  %v1345_v48 = vadd.f32 %v1341_v39, %v1252_v17  ;;  %3706 = vst [vmem:[#allocation49_spill] sm:$0xff] %v3230_v46  ;;  %v3708_v47 = vld [vmem:[#allocation13_spill] sm:$0xff]  ;;  %v1414_v29 = vsub.f32 %v1368_v52, %v3230_v46  ;;  %v3250_v52 = vstv %s2340_s24 }
 0x167   :  { %v1488_v17 = vrot.slane %v1480_v10, %v2874_v13  ;;  %v1481_v25 = vcombine.high %v1480_v10, %v1480_v10  ;;  %v1574_v28 = vcombine.high %v1573_v27, %v1573_v27 }
 0x168   :  { %v1379_v21 = vpop.permute.xlu1 %1378  ;;  %v3227_v61 = vmax.f32 %v1323_v43, 0.0  ;;  %v3242_v59 = vmax.f32 %v1414_v29, 0.0 }
 0x16a   :  { %1270 = vbcast.lane.b32.xlu0 %v3704_v55, 256  ;;  %3705 = vst [vmem:[#allocation11_spill] sm:$0xff] %v3227_v61  ;;  %v1343_v45 = vmul.f32 %v3220_v22, %v3227_v61  ;;  %v1402_v55 = vrot.slane %v1388_v12, %v2874_v13  ;;  %3710 = vst [vmem:[#allocation15_spill] sm:$0xff] %v3242_v59  ;;  %v1495_v12 = vrot.slane %v1481_v25, %v2874_v13 }
 0x16b   :  { %v1581_v61 = vrot.slane %v1573_v27, %v2874_v13  ;;  %v3274_v27 = vstv %s2345_s25  ;;  %s2585_s25 = smov [#allocation7]  }
 0x16c   :  { %v1461_v39 = vpop.permute.xlu1 %1460  ;;  %v1347_v43 = vadd.f32 %v1343_v45, %v1254_v5  ;;  %v3245_v31 = vrot.slane %v1402_v55, %v2671_v23  ;;  %v3711_v45 = vld [vmem:[#allocation14_spill] sm:$0xff]  ;;  %v1434_v5 = vmul.f32 %v3250_v52, %v3242_v59  ;;  %v3716_v59 = vld [vmem:[#allocation16_spill] sm:$0xff] }
 0x16d   :  { %v3268_v22 = vrot.slane %v1581_v61, %v2671_v23  ;;  %3717 = vst [vmem:[#allocation16_spill] sm:$0xff] %v3274_v27 }
 0x16e   :  { %1281 = vbcast.lane.b32.xlu0 %v3708_v47, 256  ;;  %v3248_v47 = vrot.slane %v1488_v17, %v2671_v23  ;;  %v1416_v29 = vsub.f32 %v1379_v21, %v3245_v31  ;;  %v3260_v17 = vrot.slane %v1495_v12, %v2671_v23  ;;  %v1438_v46 = vadd.f32 %v1434_v5, %v1345_v48 }
 0x16f   :  { %3715 = vst [vmem:[#allocation50_spill] sm:$0xff] %v3268_v22  ;;  %v1588_v12 = vrot.slane %v1574_v28, %v2874_v13 }
 0x170   :  { %v1507_v10 = vsub.f32 %v1461_v39, %v3248_v47  ;;  %v1472_v55 = vpop.permute.xlu1 %1471  ;;  %3712 = vst [vmem:[#allocation13_spill] sm:$0xff] %v3260_v17  ;;  %v3262_v57 = vmax.f32 %v1416_v29, 0.0 }
 0x171   :  { %v3288_v13 = vrot.slane %v1588_v12, %v2671_v23 }
 0x172   :  { %1363 = vbcast.lane.b32.xlu0 %v3711_v45, 256  ;;  %3713 = vst [vmem:[#allocation18_spill] sm:$0xff] %v3262_v57  ;;  %v3264_v25 = vmax.f32 %v1507_v10, 0.0  ;;  %v1509_v45 = vsub.f32 %v1472_v55, %v3260_v17  ;;  %v1436_v21 = vmul.f32 %v3250_v52, %v3262_v57  ;;  %v3720_v17 = vld [vmem:[#allocation17_spill] sm:$0xff]  ;;  %v3285_v57 = vstv %s2350_s26  ;;  %s2254_s26 = sshll.u32 %s2585_s25, 4  ;;  %s2255_s26 = int_to_ptr.vmem [resolvable:$true] %s2254_s26 }
 0x173   :  { %p2550_p0 = scmp.lt.s32.totalorder %s2255_s26, %s2255_s26 }
 0x174   :  { %3714 = vst [vmem:[#allocation14_spill] sm:$0xff] %v3264_v25  ;;  %v1554_v39 = vpop.permute.xlu1 %1553  ;;  %v1440_v29 = vadd.f32 %v1436_v21, %v1347_v43  ;;  %v1527_v10 = vmul.f32 %v3274_v27, %v3264_v25  ;;  %v3279_v61 = vmax.f32 %v1509_v45, 0.0  ;;  %v3721_v21 = vmov 0.0  }
 0x175   :  { %v1600_v48 = vsub.f32 %v1554_v39, %v3268_v22 }
 0x176   :  { %1374 = vbcast.lane.b32.xlu0 %v3716_v59, 256  ;;  %3718 = vst [vmem:[#allocation51_spill] sm:$0xff] %v3279_v61  ;;  %v1529_v39 = vmul.f32 %v3274_v27, %v3279_v61  ;;  %v3724_v61 = vld [vmem:[#allocation27_spill] sm:$0xff] }
 0x177   :  { %v3282_v55 = vmax.f32 %v1600_v48, 0.0 }
 0x178   :  { %v1636_v5 = vpop.permute.xlu0 %1635  ;;  %v1565_v28 = vpop.permute.xlu1 %1564  ;;  %v1533_v22 = vadd.f32 %v1529_v39, %v1440_v29  ;;  %v3730_v39 = vld [vmem:[#allocation22_spill] sm:$0xff] }
 0x179   :  { %v1642_v59 = vsel %vm1637_vm2, %v1636_v5, 0  ;;  %3719 = vst [vmem:[#allocation52_spill] sm:$0xff] %v3282_v55  ;;  %v1620_v43 = vmul.f32 %v3285_v57, %v3282_v55  ;;  %v1602_v48 = vsub.f32 %v1565_v28, %v3288_v13  ;;  %v1531_v5 = vadd.f32 %v1527_v10, %v1438_v46  ;;  %v3725_v28 = vld [vmem:[#allocation24_spill] sm:$0xff]  ;;  %v3726_v46 = vld [vmem:[#allocation21_spill] sm:$0xff] }
 0x17a   :  { %1456 = vbcast.lane.b32.xlu0 %v3720_v17, 256  ;;  %2399 = vmatpush3.bf16.xpose.msra.mxu1 %v1642_v59  ;;  %v3722_v59 = vld [vmem:[#allocation19_spill] sm:$0xff] }
 0x17b   :  { %2410 = vmatprep.subr.bf16.mxu1 %v3721_v21  ;;  %v3298_v23 = vmax.f32 %v1602_v48, 0.0  ;;  %v3300_v12 = vadd.f32 %v1620_v43, %v1531_v5  ;;  %v3728_v43 = vld [vmem:[#allocation25_spill] sm:$0xff]  ;;  %v3729_v48 = vld [vmem:[#allocation28_spill] sm:$0xff] }
 0x17c   :  { %v1687_v45 = vpop.permute.xlu0 %1686  ;;  %v214_v5 = vmul.f32 %v2935_v7, %v3729_v48 }
 0x17d   :  { %v1692_v17 = vsel %vm1637_vm2, %v1687_v45, 0  ;;  %3723 = vst [vmem:[#allocation17_spill] sm:$0xff] %v3300_v12  ;;  %v1622_v25 = vmul.f32 %v3285_v57, %v3298_v23  ;;  %v129_v45 = vadd.f32 %v2919_v49, %v3728_v43 }
 0x17e   :  { %1467 = vbcast.lane.b32.xlu0 %v3722_v59, 256  ;;  %2405 = vmatpush3.bf16.xpose.msra.mxu0 %v1692_v17  ;;  %v3731_v59 = vld [vmem:[#allocation20_spill] sm:$0xff] }
 0x17f   :  { %2416 = vmatprep.subr.bf16.mxu0 %v3721_v21  ;;  %v3311_v10 = vadd.f32 %v1622_v25, %v1533_v22  ;;  %v3732_v22 = vld [vmem:[#allocation26_spill] sm:$0xff]  ;;  %v218_v25 = vadd.f32 %v214_v5, %v129_v45  ;;  %v3734_v5 = vld [vmem:[#allocation29_spill] sm:$0xff] }
 0x180   :  { %v166_v55 = vpop.permute.xlu0 %165 }
 0x181   :  { %v206_v27 = vsub.f32 %v166_v55, %v3724_v61  ;;  %2401 = vmatmul.mubr.msk.bf16.vlgmr.msra.gmra.mrb[0].mxu1 %vm1637_vm2, %v3725_v28  ;;  %3727 = vst [vmem:[#allocation19_spill] sm:$0xff] %v3311_v10 }
 0x182   :  { %1549 = vbcast.lane.b32.xlu0 %v3726_v46, 256  ;;  %2412 = vmatprep.mubr.msk.bf16.mxu1 %vm2579_vm1, %v3721_v21  ;;  %v131_v46 = vadd.f32 %v2919_v49, %v3731_v59 }
 0x183   :  { %v210_v17 = vmax.f32 %v206_v27, 0.0  ;;  %v3733_v27 = vld [vmem:[#allocation23_spill] sm:$0xff] }
 0x184   :  { %v248_v29 = vpop.permute.xlu0 %247 }
 0x185   :  { %v226_v61 = vmul.f32 %v2927_v3, %v210_v17  ;;  %v297_v55 = vsub.f32 %v248_v29, %v2939_v19  ;;  %2407 = vmatmul.mubr.msk.bf16.vlgmr.msra.gmra.mrb[4].mxu0 %vm1637_vm2, %v3730_v39  ;;  %v216_v43 = vmul.f32 %v2935_v7, %v210_v17 }
 0x186   :  { %1560 = vbcast.lane.b32.xlu0 %v3732_v22, 256  ;;  %2418 = vmatprep.mubr.msk.bf16.mxu0 %vm2579_vm1, %v3721_v21 }
 0x187   :  { %v230_v48 = vadd.f32 %v226_v61, %v3733_v27  ;;  %v301_v10 = vmax.f32 %v297_v55, 0.0  ;;  %v220_v39 = vadd.f32 %v216_v43, %v131_v46  ;;  %v3735_v46 = vld [vmem:[#allocation30_spill] sm:$0xff] }
 0x188   :  { %v259_v3 = vpop.permute.xlu0 %258 }
 0x189   :  { %v307_v19 = vmul.f32 %v2951_v30, %v301_v10  ;;  %v317_v29 = vmul.f32 %v2953_v58, %v301_v10  ;;  %v299_v12 = vsub.f32 %v259_v3, %v2963_v26 }
 0x18b   :  { %v311_v49 = vadd.f32 %v307_v19, %v218_v25  ;;  %v321_v59 = vadd.f32 %v317_v29, %v2947_v20  ;;  %v303_v22 = vmax.f32 %v299_v12, 0.0 }
 0x18c   :  { %v341_v28 = vpop.permute.xlu0 %340 }
 0x18d   :  { %v309_v45 = vmul.f32 %v2951_v30, %v303_v22  ;;  %v319_v7 = vmul.f32 %v2953_v58, %v303_v22  ;;  %v390_v17 = vsub.f32 %v341_v28, %v3734_v5 }
 0x18f   :  { %v313_v61 = vadd.f32 %v309_v45, %v220_v39  ;;  %v323_v55 = vadd.f32 %v319_v7, %v230_v48  ;;  %v394_v27 = vmax.f32 %v390_v17, 0.0 }
 0x190   :  { %v352_v21 = vpop.permute.xlu0 %351 }
 0x191   :  { %v400_v10 = vmul.f32 %v2980_v32, %v394_v27  ;;  %v410_v26 = vmul.f32 %v2982_v62, %v394_v27  ;;  %v392_v25 = vsub.f32 %v352_v21, %v3735_v46 }
 0x193   :  { %v404_v43 = vadd.f32 %v400_v10, %v311_v49  ;;  %v414_v20 = vadd.f32 %v410_v26, %v321_v59  ;;  %v396_v12 = vmax.f32 %v392_v25, 0.0 }
 0x194   :  { %v434_v3 = vpop.permute.xlu0 %433 }
 0x195   :  { %v402_v30 = vmul.f32 %v2980_v32, %v396_v12  ;;  %v412_v58 = vmul.f32 %v2982_v62, %v396_v12  ;;  %v483_v28 = vsub.f32 %v434_v3, %v2990_v6 }
 0x197   :  { %v406_v39 = vadd.f32 %v402_v30, %v313_v61  ;;  %v416_v48 = vadd.f32 %v412_v58, %v323_v55  ;;  %v487_v19 = vmax.f32 %v483_v28, 0.0 }
 0x198   :  { %v445_v29 = vpop.permute.xlu0 %444 }
 0x199   :  { %v493_v22 = vmul.f32 %v3002_v9, %v487_v19  ;;  %v503_v45 = vmul.f32 %v3004_v41, %v487_v19  ;;  %v485_v21 = vsub.f32 %v445_v29, %v3000_v16 }
 0x19b   :  { %v497_v49 = vadd.f32 %v493_v22, %v404_v43  ;;  %v507_v59 = vadd.f32 %v503_v45, %v414_v20  ;;  %v489_v7 = vmax.f32 %v485_v21, 0.0 }
 0x19c   :  { %v527_v5 = vpop.permute.xlu0 %526 }
 0x19d   :  { %v495_v32 = vmul.f32 %v3002_v9, %v489_v7  ;;  %v505_v62 = vmul.f32 %v3004_v41, %v489_v7  ;;  %v576_v6 = vsub.f32 %v527_v5, %v3012_v53 }
 0x19f   :  { %v499_v17 = vadd.f32 %v495_v32, %v406_v39  ;;  %v509_v61 = vadd.f32 %v505_v62, %v416_v48  ;;  %v580_v55 = vmax.f32 %v576_v6, 0.0 }
 0x1a0   :  { %v538_v27 = vpop.permute.xlu0 %537 }
 0x1a1   :  { %v586_v10 = vmul.f32 %v3024_v50, %v580_v55  ;;  %v596_v26 = vmul.f32 %v3026_v0, %v580_v55  ;;  %v578_v16 = vsub.f32 %v538_v27, %v3020_v40 }
 0x1a3   :  { %v3350_v46 = vadd.f32 %v586_v10, %v497_v49  ;;  %v600_v25 = vadd.f32 %v596_v26, %v507_v59  ;;  %v582_v43 = vmax.f32 %v578_v16, 0.0 }
 0x1a4   :  { %v620_v20 = vpop.permute.xlu0 %619 }
 0x1a5   :  { %v588_v9 = vmul.f32 %v3024_v50, %v582_v43  ;;  %v598_v41 = vmul.f32 %v3026_v0, %v582_v43  ;;  %v669_v53 = vsub.f32 %v620_v20, %v3036_v33 }
 0x1a7   :  { %v3355_v12 = vadd.f32 %v588_v9, %v499_v17  ;;  %v602_v3 = vadd.f32 %v598_v41, %v509_v61  ;;  %v3357_v30 = vmax.f32 %v669_v53, 0.0 }
 0x1a8   :  { %v631_v58 = vpop.permute.xlu0 %630 }
 0x1a9   :  { %v689_v40 = vmul.f32 %v3052_v24, %v3357_v30  ;;  %v671_v28 = vsub.f32 %v631_v58, %v3050_v35 }
 0x1ab   :  { %v693_v39 = vadd.f32 %v689_v40, %v600_v25  ;;  %v3362_v48 = vmax.f32 %v671_v28, 0.0 }
 0x1ac   :  { %v713_v19 = vpop.permute.xlu0 %712 }
 0x1ad   :  { %v691_v50 = vmul.f32 %v3052_v24, %v3362_v48  ;;  %v762_v0 = vsub.f32 %v713_v19, %v3060_v11 }
 0x1af   :  { %v695_v33 = vadd.f32 %v691_v50, %v602_v3  ;;  %v3367_v29 = vmax.f32 %v762_v0, 0.0 }
 0x1b0   :  { %v724_v22 = vpop.permute.xlu0 %723 }
 0x1b1   :  { %v782_v45 = vmul.f32 %v3076_v14, %v3367_v29  ;;  %v764_v21 = vsub.f32 %v724_v22, %v3072_v60 }
 0x1b3   :  { %v786_v49 = vadd.f32 %v782_v45, %v693_v39  ;;  %v3372_v35 = vmax.f32 %v764_v21, 0.0 }
 0x1b4   :  { %v806_v59 = vpop.permute.xlu0 %805 }
 0x1b5   :  { %v784_v7 = vmul.f32 %v3076_v14, %v3372_v35  ;;  %v855_v24 = vsub.f32 %v806_v59, %v3086_v36 }
 0x1b7   :  { %v788_v5 = vadd.f32 %v784_v7, %v695_v33  ;;  %v3377_v11 = vmax.f32 %v855_v24, 0.0 }
 0x1b8   :  { %v817_v32 = vpop.permute.xlu0 %816 }
 0x1b9   :  { %v875_v62 = vmul.f32 %v3100_v2, %v3377_v11  ;;  %v857_v6 = vsub.f32 %v817_v32, %v3098_v63 }
 0x1bb   :  { %v879_v17 = vadd.f32 %v875_v62, %v786_v49  ;;  %v3382_v60 = vmax.f32 %v857_v6, 0.0 }
 0x1bc   :  { %v899_v61 = vpop.permute.xlu0 %898 }
 0x1bd   :  { %v877_v55 = vmul.f32 %v3100_v2, %v3382_v60  ;;  %v948_v14 = vsub.f32 %v899_v61, %v3108_v38 }
 0x1bf   :  { %v881_v27 = vadd.f32 %v877_v55, %v788_v5  ;;  %v3387_v36 = vmax.f32 %v948_v14, 0.0  ;;  %v3737_v55 = vld [vmem:[#allocation48_spill] sm:$0xff] }
 0x1c0   :  { %v910_v10 = vpop.permute.xlu0 %909 }
 0x1c1   :  { %v968_v26 = vmul.f32 %v3124_v15, %v3387_v36  ;;  %v950_v16 = vsub.f32 %v910_v10, %v3120_v56 }
 0x1c3   :  { %v972_v25 = vadd.f32 %v968_v26, %v879_v17  ;;  %v3392_v63 = vmax.f32 %v950_v16, 0.0  ;;  %v3736_v17 = vld [vmem:[#allocation12_spill] sm:$0xff]  ;;  %v3738_v16 = vld [vmem:[#allocation49_spill] sm:$0xff] }
 0x1c4   :  { %v992_v43 = vpop.permute.xlu0 %991 }
 0x1c5   :  { %v970_v20 = vmul.f32 %v3124_v15, %v3392_v63  ;;  %v1041_v2 = vsub.f32 %v992_v43, %v3134_v44 }
 0x1c7   :  { %v974_v9 = vadd.f32 %v970_v20, %v881_v27  ;;  %v3397_v38 = vmax.f32 %v1041_v2, 0.0 }
 0x1c8   :  { %v1003_v41 = vpop.permute.xlu0 %1002 }
 0x1c9   :  { %v1061_v53 = vmul.f32 %v3148_v51, %v3397_v38  ;;  %v1043_v3 = vsub.f32 %v1003_v41, %v3146_v8 }
 0x1cb   :  { %v1065_v58 = vadd.f32 %v1061_v53, %v972_v25  ;;  %v3402_v56 = vmax.f32 %v1043_v3, 0.0 }
 0x1cc   :  { %v1085_v40 = vpop.permute.xlu0 %1084 }
 0x1cd   :  { %v1063_v28 = vmul.f32 %v3148_v51, %v3402_v56  ;;  %v1134_v15 = vsub.f32 %v1085_v40, %v3156_v1 }
 0x1cf   :  { %v1067_v39 = vadd.f32 %v1063_v28, %v974_v9  ;;  %v3407_v44 = vmax.f32 %v1134_v15, 0.0 }
 0x1d0   :  { %v1096_v19 = vpop.permute.xlu0 %1095 }
 0x1d1   :  { %v1154_v50 = vmul.f32 %v3172_v42, %v3407_v44  ;;  %v1136_v0 = vsub.f32 %v1096_v19, %v3168_v54 }
 0x1d3   :  { %v1158_v33 = vadd.f32 %v1154_v50, %v1065_v58  ;;  %v3412_v8 = vmax.f32 %v1136_v0, 0.0  ;;  %v3740_v50 = vld [vmem:[#allocation13_spill] sm:$0xff] }
 0x1d4   :  { %v1178_v22 = vpop.permute.xlu0 %1177 }
 0x1d5   :  { %v1156_v45 = vmul.f32 %v3172_v42, %v3412_v8  ;;  %v1227_v51 = vsub.f32 %v1178_v22, %v3182_v34 }
 0x1d7   :  { %v1160_v21 = vadd.f32 %v1156_v45, %v1067_v39  ;;  %v3417_v1 = vmax.f32 %v1227_v51, 0.0  ;;  %v3739_v39 = vld [vmem:[#allocation16_spill] sm:$0xff]  ;;  %v3741_v51 = vld [vmem:[#allocation50_spill] sm:$0xff] }
 0x1d8   :  { %v1189_v49 = vpop.permute.xlu0 %1188 }
 0x1d9   :  { %v1247_v59 = vmul.f32 %v3196_v4, %v3417_v1  ;;  %v1229_v7 = vsub.f32 %v1189_v49, %v3194_v18 }
 0x1db   :  { %v1251_v24 = vadd.f32 %v1247_v59, %v1158_v33  ;;  %v3422_v54 = vmax.f32 %v1229_v7, 0.0 }
 0x1dc   :  { %v1271_v5 = vpop.permute.xlu0 %1270 }
 0x1dd   :  { %v1249_v32 = vmul.f32 %v3196_v4, %v3422_v54  ;;  %v1320_v42 = vsub.f32 %v1271_v5, %v3204_v37 }
 0x1df   :  { %v1253_v62 = vadd.f32 %v1249_v32, %v1160_v21  ;;  %v3427_v34 = vmax.f32 %v1320_v42, 0.0 }
 0x1e0   :  { %v1282_v6 = vpop.permute.xlu0 %1281 }
 0x1e1   :  { %v1340_v61 = vmul.f32 %v3736_v17, %v3427_v34  ;;  %v1322_v14 = vsub.f32 %v1282_v6, %v3737_v55  ;;  %v3742_v6 = vld [vmem:[#allocation33_spill] sm:$0xff]  ;;  %v771_v55 = vstv %s2304_s28 }
 0x1e3   :  { %v1344_v27 = vadd.f32 %v1340_v61, %v1251_v24  ;;  %v3432_v18 = vmax.f32 %v1322_v14, 0.0 }
 0x1e4   :  { %v1364_v10 = vpop.permute.xlu0 %1363 }
 0x1e5   :  { %v1342_v26 = vmul.f32 %v3736_v17, %v3432_v18  ;;  %v1413_v4 = vsub.f32 %v1364_v10, %v3738_v16 }
 0x1e7   :  { %v1346_v25 = vadd.f32 %v1342_v26, %v1253_v62  ;;  %v3437_v37 = vmax.f32 %v1413_v4, 0.0  ;;  %v678_v62 = vstv %s2299_s27  ;;  %v3745_v26 = vld [vmem:[#allocation35_spill] sm:$0xff] }
 0x1e8   :  { %v1375_v43 = vpop.permute.xlu0 %1374  ;;  %v680_v17 = vmul.f32 %v678_v62, %v3742_v6  ;;  %v679_v61 = vmul.f32 %v678_v62, %v3357_v30  ;;  %v773_v16 = vmul.f32 %v771_v55, %v3745_v26  ;;  %v681_v4 = vmul.f32 %v678_v62, %v3362_v48 }
 0x1e9   :  { %v1433_v20 = vmul.f32 %v3250_v52, %v3437_v37  ;;  %v1415_v2 = vsub.f32 %v1375_v43, %v3245_v31  ;;  %v864_v43 = vstv %s2309_s0 }
 0x1eb   :  { %v1437_v9 = vadd.f32 %v1433_v20, %v1344_v27  ;;  %v3442_v41 = vmax.f32 %v1415_v2, 0.0  ;;  %v3744_v27 = vld [vmem:[#allocation31_spill] sm:$0xff]  ;;  %v3746_v20 = vld [vmem:[#allocation32_spill] sm:$0xff] }
 0x1ec   :  { %v1457_v53 = vpop.permute.xlu0 %1456  ;;  %v684_v10 = vadd.f32 %v680_v17, %v3744_v27  ;;  %v3754_v27 = vld [vmem:[#allocation43_spill] sm:$0xff] }
 0x1ed   :  { %v1435_v3 = vmul.f32 %v3250_v52, %v3442_v41  ;;  %v1506_v58 = vsub.f32 %v1457_v53, %v3248_v47 }
 0x1ee   :  { %v777_v53 = vadd.f32 %v773_v16, %v684_v10 }
 0x1ef   :  { %v1439_v40 = vadd.f32 %v1435_v3, %v1346_v25  ;;  %v3447_v28 = vmax.f32 %v1506_v58, 0.0  ;;  %v772_v25 = vmul.f32 %v771_v55, %v3367_v29  ;;  %v3748_v3 = vld [vmem:[#allocation37_spill] sm:$0xff]  ;;  %v3749_v29 = vld [vmem:[#allocation38_spill] sm:$0xff] }
 0x1f0   :  { %v1468_v15 = vpop.permute.xlu0 %1467  ;;  %v866_v58 = vmul.f32 %v864_v43, %v3748_v3 }
 0x1f1   :  { %v1526_v19 = vmul.f32 %v3739_v39, %v3447_v28  ;;  %v1508_v0 = vsub.f32 %v1468_v15, %v3740_v50  ;;  %v868_v50 = vmul.f32 %v864_v43, %v3749_v29 }
 0x1f3   :  { %v3452_v33 = vmax.f32 %v1508_v0, 0.0  ;;  %v1530_v31 = vadd.f32 %v1526_v19, %v1437_v9  ;;  %v3747_v9 = vld [vmem:[#allocation36_spill] sm:$0xff]  ;;  %v957_v19 = vstv %s2314_s29  ;;  %v870_v0 = vadd.f32 %v866_v58, %v777_v53 }
 0x1f4   :  { %v1550_v22 = vpop.permute.xlu0 %1549  ;;  %v775_v30 = vmul.f32 %v771_v55, %v3747_v9  ;;  %v960_v17 = vmul.f32 %v957_v19, %v3392_v63  ;;  %v3755_v63 = vld [vmem:[#allocation44_spill] sm:$0xff] }
 0x1f5   :  { %v1528_v45 = vmul.f32 %v3739_v39, %v3452_v33  ;;  %v1599_v52 = vsub.f32 %v1550_v22, %v3741_v51  ;;  %v774_v39 = vmul.f32 %v771_v55, %v3372_v35  ;;  %v3751_v35 = vld [vmem:[#allocation40_spill] sm:$0xff]  ;;  %v1143_v55 = vstv %s2324_s30 }
 0x1f6   :  { %v1145_v10 = vmul.f32 %v1143_v55, %v3754_v27  ;;  %v1146_v3 = vmul.f32 %v1143_v55, %v3412_v8  ;;  %v3759_v8 = vld [vmem:[#allocation11_spill] sm:$0xff] }
 0x1f7   :  { %v3457_v21 = vmax.f32 %v1599_v52, 0.0  ;;  %v1532_v47 = vadd.f32 %v1528_v45, %v1439_v40  ;;  %v685_v40 = vadd.f32 %v681_v4, %v3355_v12  ;;  %v867_v52 = vmul.f32 %v864_v43, %v3382_v60  ;;  %v3753_v60 = vld [vmem:[#allocation42_spill] sm:$0xff] }
 0x1f8   :  { %v1561_v49 = vpop.permute.xlu0 %1560  ;;  %v1050_v12 = vstv %s2319_s1  ;;  %v1144_v4 = vmul.f32 %v1143_v55, %v3407_v44 }
 0x1f9   :  { %v1619_v59 = vmul.f32 %v3285_v57, %v3457_v21  ;;  %v1601_v7 = vsub.f32 %v1561_v49, %v3288_v13  ;;  %v3743_v13 = vld [vmem:[#allocation34_spill] sm:$0xff]  ;;  %v778_v45 = vadd.f32 %v774_v39, %v685_v40  ;;  %v1329_v40 = vstv %s2334_s8 }
 0x1fa   :  { %v682_v14 = vmul.f32 %v678_v62, %v3743_v13 }
 0x1fb   :  { %v3462_v24 = vmax.f32 %v1601_v7, 0.0  ;;  %v3464_v5 = vadd.f32 %v1619_v59, %v1530_v31  ;;  %v3750_v31 = vld [vmem:[#allocation39_spill] sm:$0xff]  ;;  %v961_v59 = vmul.f32 %v957_v19, %v3751_v35  ;;  %v3752_v7 = vld [vmem:[#allocation41_spill] sm:$0xff]  ;;  %v871_v62 = vadd.f32 %v867_v52, %v778_v45 }
 0x1fc   :  { %v686_v2 = vadd.f32 %v682_v14, %v3746_v20  ;;  %v959_v22 = vmul.f32 %v957_v19, %v3750_v31  ;;  %v1054_v14 = vmul.f32 %v1050_v12, %v3753_v60  ;;  %v1147_v20 = vmul.f32 %v1143_v55, %v3755_v63 }
 0x1fd   :  { %v1621_v32 = vmul.f32 %v3285_v57, %v3462_v24  ;;  %v683_v57 = vadd.f32 %v679_v61, %v3350_v46  ;;  %v865_v46 = vmul.f32 %v864_v43, %v3377_v11  ;;  %v1051_v61 = vmul.f32 %v1050_v12, %v3397_v38 }
 0x1fe   :  { %v779_v48 = vadd.f32 %v775_v30, %v686_v2  ;;  %v963_v11 = vadd.f32 %v959_v22, %v870_v0  ;;  %v964_v26 = vadd.f32 %v960_v17, %v871_v62  ;;  %v3756_v2 = vld [vmem:[#allocation45_spill] sm:$0xff]  ;;  %v1330_v0 = vmul.f32 %v1329_v40, %v3427_v34  ;;  %v3762_v62 = vld [vmem:[#allocation14_spill] sm:$0xff] }
 0x1ff   :  { %v3468_v42 = vadd.f32 %v1621_v32, %v1532_v47  ;;  %v776_v15 = vadd.f32 %v772_v25, %v683_v57  ;;  %v958_v47 = vmul.f32 %v957_v19, %v3387_v36  ;;  %v1052_v32 = vmul.f32 %v1050_v12, %v3752_v7 }
 0x200   :  { %v872_v49 = vadd.f32 %v868_v50, %v779_v48  ;;  %v1053_v57 = vmul.f32 %v1050_v12, %v3402_v56  ;;  %v1236_v25 = vstv %s2329_s7  ;;  %v3757_v56 = vld [vmem:[#allocation46_spill] sm:$0xff]  ;;  %v1422_v31 = vstv %s2339_s9 }
 0x201   :  { %v869_v51 = vadd.f32 %v865_v46, %v776_v15  ;;  %v1056_v36 = vadd.f32 %v1052_v32, %v963_v11  ;;  %v1238_v9 = vmul.f32 %v1236_v25, %v3756_v2  ;;  %v1237_v58 = vmul.f32 %v1236_v25, %v3417_v1  ;;  %v3758_v46 = vld [vmem:[#allocation47_spill] sm:$0xff]  ;;  %v3761_v32 = vld [vmem:[#allocation18_spill] sm:$0xff] }
 0x202   :  { %v965_v13 = vadd.f32 %v961_v59, %v872_v49  ;;  %v1057_v30 = vadd.f32 %v1053_v57, %v964_v26  ;;  %v1240_v39 = vmul.f32 %v1236_v25, %v3757_v56  ;;  %v1331_v19 = vmul.f32 %v1329_v40, %v3758_v46  ;;  %v3764_v26 = vld [vmem:[#allocation51_spill] sm:$0xff] }
 0x203   :  { %v962_v6 = vadd.f32 %v958_v47, %v869_v51  ;;  %v1149_v38 = vadd.f32 %v1145_v10, %v1056_v36  ;;  %v1239_v50 = vmul.f32 %v1236_v25, %v3422_v54  ;;  %v1333_v45 = vmul.f32 %v1329_v40, %v3759_v8  ;;  %v3760_v51 = vld [vmem:[#allocation15_spill] sm:$0xff] }
 0x204   :  { %v1058_v43 = vadd.f32 %v1054_v14, %v965_v13  ;;  %v1150_v48 = vadd.f32 %v1146_v3, %v1057_v30  ;;  %v1424_v52 = vmul.f32 %v1422_v31, %v3760_v51  ;;  %v1332_v49 = vmul.f32 %v1329_v40, %v3432_v18  ;;  %v3763_v18 = vld [vmem:[#allocation52_spill] sm:$0xff] }
 0x205   :  { %v1055_v16 = vadd.f32 %v1051_v61, %v962_v6  ;;  %v1242_v44 = vadd.f32 %v1238_v9, %v1149_v38  ;;  %v1423_v35 = vmul.f32 %v1422_v31, %v3437_v37  ;;  %v1515_v59 = vstv %s2344_s11 }
 0x206   :  { %v1151_v15 = vadd.f32 %v1147_v20, %v1058_v43  ;;  %v1243_v47 = vadd.f32 %v1239_v50, %v1150_v48  ;;  %v1426_v54 = vmul.f32 %v1422_v31, %v3761_v32  ;;  %v1517_v34 = vmul.f32 %v1515_v59, %v3762_v62  ;;  %v3766_v62 = vld [vmem:[#allocation22_spill] sm:$0xff] }
 0x207   :  { %v1148_v53 = vadd.f32 %v1144_v4, %v1055_v16  ;;  %v1335_v1 = vadd.f32 %v1331_v19, %v1242_v44  ;;  %v1608_v6 = vstv %s2349_s2  ;;  %v1425_v55 = vmul.f32 %v1422_v31, %v3442_v41 }
 0x208   :  { %v1244_v22 = vadd.f32 %v1240_v39, %v1151_v15  ;;  %v1336_v17 = vadd.f32 %v1332_v49, %v1243_v47  ;;  %v1516_v13 = vmul.f32 %v1515_v59, %v3447_v28  ;;  %v1609_v60 = vmul.f32 %v1608_v6, %v3457_v21 }
 0x209   :  { %v1241_v29 = vadd.f32 %v1237_v58, %v1148_v53  ;;  %v1428_v7 = vadd.f32 %v1424_v52, %v1335_v1  ;;  %v1610_v36 = vmul.f32 %v1608_v6, %v3763_v18  ;;  %v1518_v10 = vmul.f32 %v1515_v59, %v3452_v33 }
 0x20a   :  { %v1337_v11 = vadd.f32 %v1333_v45, %v1244_v22  ;;  %v1429_v27 = vadd.f32 %v1425_v55, %v1336_v17  ;;  %v1519_v16 = vmul.f32 %v1515_v59, %v3764_v26  ;;  %v1611_v4 = vmul.f32 %v1608_v6, %v3462_v24 }
 0x20b   :  { %v1334_v12 = vadd.f32 %v1330_v0, %v1241_v29  ;;  %v1521_v37 = vadd.f32 %v1517_v34, %v1428_v7  ;;  %v1612_v41 = vmul.f32 %v1608_v6, %v3298_v23 }
 0x20c   :  { %v1430_v14 = vadd.f32 %v1426_v54, %v1337_v11  ;;  %v1522_v21 = vadd.f32 %v1518_v10, %v1429_v27  ;;  %v3765_v54 = vld [vmem:[#allocation24_spill] sm:$0xff] }
 0x20d   :  { %v1427_v61 = vadd.f32 %v1423_v35, %v1334_v12  ;;  %v1614_v63 = vadd.f32 %v1610_v36, %v1521_v37 }
 0x20e   :  { %v1523_v38 = vadd.f32 %v1519_v16, %v1430_v14  ;;  %v1615_v53 = vadd.f32 %v1611_v4, %v1522_v21  ;;  %v3767_v14 = vmov 0.0  }
 0x20f   :  { %v1520_v57 = vadd.f32 %v1516_v13, %v1427_v61 }
 0x210   :  { %v1616_v15 = vadd.f32 %v1612_v41, %v1523_v38  ;;  %v1877_v41 = vld [vmem:[%s3608_s4] sm:$0xff] }
 0x211   :  { %v1613_v25 = vadd.f32 %v1609_v60, %v1520_v57 }
 0x254   :  { %v1678_v43 = vpop.f32.mrb[0].mxu1 }
 0x255   :  { %v1679_v28 = vadd.f32 %v1678_v43, %v1613_v25  ;;  %v2402_v20 = vpop.f32.mrb[1].mxu1 }
 0x256   :  { %v1681_v2 = vpop.f32.mrb[2].mxu1 }
 0x257   :  { %v1682_v9 = vadd.f32 %v1681_v2, %v1614_v63  ;;  %v2403_v30 = vpop.f32.mrb[3].mxu1  ;;  %v1735_v33 = vsel %vm1637_vm2, %v1679_v28, -inf }
 0x258   :  { %v1728_v3 = vpop.f32.mrb[4].mxu0  ;;  %1736 = vmax.xlane.f32.xlu0 %v1735_v33 }
 0x259   :  { %v1729_v58 = vadd.f32 %v1728_v3, %v1615_v53  ;;  %v2408_v40 = vpop.f32.mrb[5].mxu0  ;;  %v1738_v24 = vsel %vm1637_vm2, %v1682_v9, -inf }
 0x25a   :  { %1739 = vmax.xlane.f32.xlu1 %v1738_v24  ;;  %v1731_v56 = vpop.f32.mrb[6].mxu0 }
 0x25b   :  { %v1732_v23 = vadd.f32 %v1731_v56, %v1616_v15  ;;  %v2409_v39 = vpop.f32.mrb[7].mxu0  ;;  %v1741_v44 = vsel %vm1637_vm2, %v1729_v58, -inf }
 0x25c   :  { %1742 = vmax.xlane.f32.xlu0 %v1741_v44 }
 0x25d   :  { %v1744_v46 = vsel %vm1637_vm2, %v1732_v23, -inf }
 0x260   :  { %1745 = vmax.xlane.f32.xlu0 %v1744_v46  ;;  %v3768_v46 = vld [vmem:[#allocation17_spill] sm:$0xff] }
 0x2e5   :  { %v1737_v19 = vpop.xlane.xlu0 %1736 }
 0x2e6   :  { %v1747_v48 = vsub.f32 %v1679_v28, %v1737_v19  ;;  %v1878_v28 = vld [vmem:[%s3608_s4 + $0x8] sm:$0xff] }
 0x2e7   :  { %v1740_v29 = vpop.xlane.xlu1 %1739  ;;  %v1879_v20 = vpack.c.bf16 %v1878_v28, %v1877_v41 }
 0x2e8   :  { %v1751_v31 = vmul.f32 1.442695, %v1747_v48  ;;  %v1748_v22 = vsub.f32 %v1682_v9, %v1740_v29 }
 0x2e9   :  { %v1743_v50 = vpop.xlane.xlu0 %1742 }
 0x2ea   :  { %v1749_v0 = vsub.f32 %v1729_v58, %v1743_v50  ;;  %v1753_v51 = vmul.f32 1.442695, %v1748_v22 }
 0x2ec   :  { %v1755_v8 = vmul.f32 1.442695, %v1749_v0 }
 0x2ed   :  { %v1746_v45 = vpop.xlane.xlu0 %1745 }
 0x2ee   :  { %2479 = vpow2.f32 %v1755_v8  ;;  %v1750_v1 = vsub.f32 %v1732_v23, %v1746_v45 }
 0x2ef   :  { %2481 = vpow2.f32 %v1751_v31 }
 0x2f0   :  { %v1757_v52 = vmul.f32 1.442695, %v1750_v1 }
 0x2f2   :  { %2483 = vpow2.f32 %v1757_v52 }
 0x2f3   :  { %2485 = vpow2.f32 %v1753_v51 }
 0x2f8   :  { %v2480_v47 = vpop.eup %2479 }
 0x2f9   :  { %v1765_v12 = vsel %vm1637_vm2, %v2480_v47, 0.0  ;;  %v2482_v49 = vpop.eup %2481 }
 0x2fa   :  { %1766 = vadd.xlane.f32.xlu1 %v1765_v12  ;;  %v1759_v59 = vsel %vm1637_vm2, %v2482_v49, 0.0 }
 0x2fc   :  { %v2484_v35 = vpop.eup %2483 }
 0x2fd   :  { %v1768_v11 = vsel %vm1637_vm2, %v2484_v35, 0.0  ;;  %v2486_v7 = vpop.eup %2485 }
 0x2fe   :  { %1760 = vadd.xlane.f32.xlu1 %v1759_v59  ;;  %1769 = vadd.xlane.f32.xlu0 %v1768_v11  ;;  %v1762_v32 = vsel %vm1637_vm2, %v2486_v7, 0.0  ;;  %v3769_v59 = vld [vmem:[#allocation19_spill] sm:$0xff] }
 0x302   :  { %1763 = vadd.xlane.f32.xlu0 %v1762_v32 }
 0x30f   :  { %1781 = vrot.lane.b32.xlu1 %v3765_v54, %s2581_s12 }
 0x313   :  { %1941 = vrot.lane.b32.xlu1 %v3765_v54, %s2582_s13 }
 0x317   :  { %1992 = vrot.lane.b32.xlu1 %v3766_v62, %s2582_s13 }
 0x318   :  { %1828 = vrot.lane.b32.xlu0 %v3766_v62, %s2581_s12 }
 0x31b   :  { %1990 = vrot.lane.b32.xlu1 %v3766_v62, %s2583_s14 }
 0x31c   :  { %1939 = vrot.lane.b32.xlu0 %v3765_v54, %s2583_s14 }
 0x387   :  { %v1767_v34 = vpop.xlane.xlu1 %1766 }
 0x388   :  { %2487 = vrcp.f32 %v1767_v34 }
 0x38b   :  { %v1761_v6 = vpop.xlane.xlu1 %1760  ;;  %v1770_v17 = vpop.xlane.xlu0 %1769 }
 0x38c   :  { %2489 = vrcp.f32 %v1770_v17 }
 0x38d   :  { %2491 = vrcp.f32 %v1761_v6 }
 0x38f   :  { %v1782_v61 = vpop.permute.xlu1 %1781  ;;  %v1764_v55 = vpop.xlane.xlu0 %1763 }
 0x390   :  { %2493 = vrcp.f32 %v1764_v55  ;;  %2411 = vmatpush3.bf16.msra.mxu1 %v1782_v61 }
 0x391   :  { %2422 = vmatprep.subr.bf16.mxu1 %v1879_v20 }
 0x392   :  { %v2488_v60 = vpop.eup %2487 }
 0x393   :  { %v1829_v13 = vpop.permute.xlu0 %1828  ;;  %v1777_v37 = vmul.f32 %v2488_v60, %v2480_v47  ;;  %v1942_v10 = vpop.permute.xlu1 %1941 }
 0x394   :  { %2417 = vmatpush3.bf16.msra.mxu0 %v1829_v13  ;;  %v1947_v25 = vsel %vm1637_vm2, %v1942_v10, 0 }
 0x395   :  { %2428 = vmatprep.subr.bf16.mxu0 %v3767_v14 }
 0x396   :  { %v2490_v18 = vpop.eup %2489 }
 0x397   :  { %v2492_v36 = vpop.eup %2491  ;;  %v1778_v27 = vmul.f32 %v2490_v18, %v2484_v35  ;;  %v1940_v63 = vpop.permute.xlu0 %1939 }
 0x398   :  { %v1775_v57 = vmul.f32 %v2492_v36, %v2482_v49  ;;  %v1993_v58 = vpop.permute.xlu1 %1992 }
 0x399   :  { %v1780_v16 = vpack.c.bf16 %v1778_v27, %v1777_v37  ;;  %v1998_v56 = vsel %vm1637_vm2, %v1993_v58, 0 }
 0x39a   :  { %v2494_v26 = vpop.eup %2493 }
 0x39b   :  { %v1776_v4 = vmul.f32 %v2494_v26, %v2486_v7  ;;  %2419 = vmatmul.mubr.msk.bf16.vlgmr.msra.gmra.mrb[8].mxu0 %vm1637_vm2, %v1780_v16 }
 0x39c   :  { %2430 = vmatprep.mubr.msk.bf16.mxu0 %vm2579_vm1, %v3767_v14 }
 0x39d   :  { %2429 = vmatpush3.bf16.xpose.msra.mxu0 %v1947_v25  ;;  %v1779_v43 = vpack.c.bf16 %v1776_v4, %v1775_v57 }
 0x39e   :  { %2440 = vmatprep.subr.bf16.mxu0 %v3767_v14 }
 0x39f   :  { %2413 = vmatmul.mubr.msk.bf16.vlgmr.msra.gmra.mrb[4].mxu1 %vm1637_vm2, %v1779_v43 }
 0x3a0   :  { %2423 = vmatpush3.bf16.msra.mxu1 %v1879_v20 }
 0x3a1   :  { %2434 = vmatprep.subr.bf16.mxu1 %v3767_v14 }
 0x3a4   :  { %2431 = vmatmul.mubr.msk.bf16.vlgmr.msra.gmra.mrb[12].mxu0 %vm1637_vm2, %v1940_v63 }
 0x3a5   :  { %2442 = vmatprep.mubr.msk.bf16.mxu0 %vm2579_vm1, %v3767_v14 }
 0x46e   :  { %v1868_v21 = vpop.f32.mrb[8].mxu0 }
 0x46f   :  { %v2420_v38 = vpop.f32.mrb[9].mxu0 }
 0x470   :  { %v1871_v2 = vpop.f32.mrb[10].mxu0 }
 0x471   :  { %v1876_v9 = vpack.c.bf16 %v1871_v2, %v1868_v21  ;;  %v2421_v30 = vpop.f32.mrb[11].mxu0 }
 0x472   :  { %v1821_v53 = vpop.f32.mrb[4].mxu1  ;;  %v2184_v30 = vld [vmem:[%s3608_s4 + $0x18] sm:$0xff] }
 0x473   :  { %v2414_v33 = vpop.f32.mrb[5].mxu1 }
 0x474   :  { %v1824_v3 = vpop.f32.mrb[6].mxu1 }
 0x475   :  { %v1875_v40 = vpack.c.bf16 %v1824_v3, %v1821_v53  ;;  %v2415_v24 = vpop.f32.mrb[7].mxu1 }
 0x477   :  { %2424 = vmatprep.mubr.msk.bf16.mxu1 %vm1637_vm2, %v1875_v40  ;;  %v1983_v15 = vpop.f32.mrb[12].mxu0 }
 0x478   :  { %v1984_v23 = vadd.f32 %v1983_v15, %v3464_v5  ;;  %2425 = vmatmul.mubr.msk.bf16.vlgmr.msra.gmra.mrb[8].mxu1 %vm1637_vm2, %v1876_v9  ;;  %v2432_v39 = vpop.f32.mrb[13].mxu0  ;;  %v1991_v5 = vpop.permute.xlu1 %1990  ;;  %v2183_v9 = vld [vmem:[%s3608_s4 + $0x10] sm:$0xff] }
 0x479   :  { %2435 = vmatpush3.bf16.xpose.msra.mxu1 %v1998_v56  ;;  %v1986_v44 = vpop.f32.mrb[14].mxu0  ;;  %2436 = vmatprep.mubr.msk.bf16.mxu1 %vm2579_vm1, %v3767_v14  ;;  %v2185_v53 = vpack.c.bf16 %v2184_v30, %v2183_v9 }
 0x47a   :  { %v1987_v19 = vadd.f32 %v1986_v44, %v3768_v46  ;;  %v2433_v48 = vpop.f32.mrb[15].mxu0  ;;  %v2041_v29 = vsel %vm1637_vm2, %v1984_v23, -inf  ;;  %2446 = vmatprep.subr.bf16.mxu1 %v3767_v14  ;;  %v2351_v46 = vld [vmem:[%s3608_s4 + $0x20] ss:$0 sm:$0xff]  ;;  %s2545_s4 = scalar_lea.vmem %s2255_s26, 512 }
 0x47b   :  { %2042 = vmax.xlane.f32.xlu0 %v2041_v29  ;;  %p2546_p13 = scmp.ne.s32.totalorder %s2255_s26, %s2545_s4  ;;  %p2551_p1 = scmp.lt.s32.totalorder %s2545_s4, %s2545_s4 }
 0x47c   :  { %v2044_v50 = vsel %vm1637_vm2, %v1987_v19, -inf }
 0x47d   :  { %2045 = vmax.xlane.f32.xlu1 %v2044_v50  ;;  %p2552_p2 = por %p2551_p1, %p2550_p0 }
 0x47f   :  { %p2553_p3 = pnand %p2552_p2, %p2546_p13 }
 0x480   :  { %2437 = vmatmul.mubr.msk.bf16.vlgmr.msra.gmra.mrb[12].mxu1 %vm1637_vm2, %v1991_v5 }
 0x481   :  { %2448 = vmatprep.mubr.msk.bf16.mxu1 %vm2579_vm1, %v3767_v14 }
 0x508   :  { %v2043_v0 = vpop.xlane.xlu0 %2042 }
 0x509   :  { %v2053_v31 = vsub.f32 %v1984_v23, %v2043_v0 }
 0x50a   :  { %v2046_v1 = vpop.xlane.xlu1 %2045 }
 0x50b   :  { %v2057_v22 = vmul.f32 1.442695, %v2053_v31  ;;  %v2054_v51 = vsub.f32 %v1987_v19, %v2046_v1 }
 0x50d   :  { %2495 = vpow2.f32 %v2057_v22  ;;  %v2059_v52 = vmul.f32 1.442695, %v2054_v51 }
 0x50f   :  { %2497 = vpow2.f32 %v2059_v52 }
 0x517   :  { %v2496_v8 = vpop.eup %2495 }
 0x518   :  { %v2065_v45 = vsel %vm1637_vm2, %v2496_v8, 0.0 }
 0x519   :  { %2066 = vadd.xlane.f32.xlu1 %v2065_v45  ;;  %v2498_v6 = vpop.eup %2497 }
 0x51a   :  { %v2068_v17 = vsel %vm1637_vm2, %v2498_v6, 0.0 }
 0x553   :  { %v2034_v47 = vpop.f32.mrb[12].mxu1 }
 0x554   :  { %v2035_v12 = vadd.f32 %v2034_v47, %v3468_v42  ;;  %v2438_v49 = vpop.f32.mrb[13].mxu1 }
 0x555   :  { %v2037_v35 = vpop.f32.mrb[14].mxu1 }
 0x556   :  { %v2038_v11 = vadd.f32 %v2037_v35, %v3769_v59  ;;  %v2439_v7 = vpop.f32.mrb[15].mxu1  ;;  %v2047_v32 = vsel %vm1637_vm2, %v2035_v12, -inf }
 0x557   :  { %2048 = vmax.xlane.f32.xlu0 %v2047_v32 }
 0x558   :  { %v2050_v34 = vsel %vm1637_vm2, %v2038_v11, -inf }
 0x55b   :  { %2051 = vmax.xlane.f32.xlu0 %v2050_v34 }
 0x55f   :  { %2069 = vadd.xlane.f32.xlu0 %v2068_v17 }
 0x5a6   :  { %v2067_v26 = vpop.xlane.xlu1 %2066 }
 0x5e4   :  { %v2049_v61 = vpop.xlane.xlu0 %2048 }
 0x5e5   :  { %v2055_v55 = vsub.f32 %v2035_v12, %v2049_v61 }
 0x5e7   :  { %v2061_v13 = vmul.f32 1.442695, %v2055_v55 }
 0x5e8   :  { %v2052_v60 = vpop.xlane.xlu0 %2051 }
 0x5e9   :  { %2499 = vpow2.f32 %v2061_v13  ;;  %v2056_v42 = vsub.f32 %v2038_v11, %v2052_v60 }
 0x5eb   :  { %v2063_v14 = vmul.f32 1.442695, %v2056_v42 }
 0x5ec   :  { %v2070_v10 = vpop.xlane.xlu0 %2069 }
 0x5ed   :  { %2501 = vpow2.f32 %v2063_v14 }
 0x5ee   :  { %2503 = vrcp.f32 %v2070_v10 }
 0x5ef   :  { %2505 = vrcp.f32 %v2067_v26 }
 0x5f3   :  { %v2500_v18 = vpop.eup %2499 }
 0x5f4   :  { %v2071_v36 = vsel %vm1637_vm2, %v2500_v18, 0.0 }
 0x5f5   :  { %2072 = vadd.xlane.f32.xlu1 %v2071_v36 }
 0x5f7   :  { %v2502_v37 = vpop.eup %2501 }
 0x5f8   :  { %v2074_v27 = vsel %vm1637_vm2, %v2502_v37, 0.0  ;;  %v2504_v16 = vpop.eup %2503 }
 0x5f9   :  { %2075 = vadd.xlane.f32.xlu0 %v2074_v27  ;;  %v2506_v4 = vpop.eup %2505  ;;  %v2082_v25 = vmul.f32 %v2504_v16, %v2498_v6 }
 0x5fa   :  { %v2081_v43 = vmul.f32 %v2506_v4, %v2496_v8 }
 0x5fc   :  { %v2085_v28 = vpack.c.bf16 %v2082_v25, %v2081_v43 }
 0x606   :  { %2087 = vrot.lane.b32.xlu1 %v3765_v54, %s2584_s18 }
 0x60f   :  { %2134 = vrot.lane.b32.xlu0 %v3766_v62, %s2584_s18 }
 0x682   :  { %v2073_v57 = vpop.xlane.xlu1 %2072 }
 0x683   :  { %2507 = vrcp.f32 %v2073_v57 }
 0x686   :  { %v2076_v63 = vpop.xlane.xlu0 %2075  ;;  %v2088_v41 = vpop.permute.xlu1 %2087 }
 0x687   :  { %2509 = vrcp.f32 %v2076_v63  ;;  %2441 = vmatpush3.bf16.msra.mxu0 %v2088_v41 }
 0x68a   :  { %v2135_v20 = vpop.permute.xlu0 %2134  ;;  %2443 = vmatmul.mubr.msk.bf16.vlgmr.msra.gmra.mrb[16].mxu0 %vm1637_vm2, %v2085_v28 }
 0x68b   :  { %2447 = vmatpush3.bf16.msra.mxu1 %v2135_v20 }
 0x68c   :  { %2452 = vmatprep.subr.bf16.mxu1 %v2185_v53 }
 0x68d   :  { %v2508_v54 = vpop.eup %2507 }
 0x68e   :  { %v2083_v21 = vmul.f32 %v2508_v54, %v2500_v18 }
 0x691   :  { %v2510_v62 = vpop.eup %2509 }
 0x692   :  { %v2084_v38 = vmul.f32 %v2510_v62, %v2502_v37 }
 0x694   :  { %v2086_v2 = vpack.c.bf16 %v2084_v38, %v2083_v21 }
 0x696   :  { %2449 = vmatmul.mubr.msk.bf16.vlgmr.msra.gmra.mrb[16].mxu1 %vm1637_vm2, %v2086_v2 }
 0x697   :  { %2453 = vmatpush3.bf16.msra.mxu1 %v2185_v53 }
 0x75d   :  { %v2127_v33 = vpop.f32.mrb[16].mxu0 }
 0x75e   :  { %v2444_v3 = vpop.f32.mrb[17].mxu0 }
 0x75f   :  { %v2130_v58 = vpop.f32.mrb[18].mxu0 }
 0x760   :  { %v2181_v40 = vpack.c.bf16 %v2130_v58, %v2127_v33  ;;  %v2445_v24 = vpop.f32.mrb[19].mxu0 }
 0x762   :  { %2454 = vmatprep.mubr.msk.bf16.mxu1 %vm1637_vm2, %v2181_v40 }
 0x769   :  { %v2174_v15 = vpop.f32.mrb[16].mxu1 }
 0x76a   :  { %v2450_v56 = vpop.f32.mrb[17].mxu1 }
 0x76b   :  { %v2177_v23 = vpop.f32.mrb[18].mxu1 }
 0x76c   :  { %v2182_v39 = vpack.c.bf16 %v2177_v23, %v2174_v15  ;;  %v2451_v44 = vpop.f32.mrb[19].mxu1 }
 0x76e   :  { %2455 = vmatmul.mubr.msk.bf16.vlgmr.msra.gmra.mrb[8].mxu1 %vm1637_vm2, %v2182_v39 }
 0x841   :  { %v2456_v19 = vpop.f32.mrb[8].mxu1 }
 0x842   :  { %v2458_v48 = vadd.f32 %v2456_v19, %v2351_v46  ;;  %v2226_v29 = vpop.f32.mrb[9].mxu1 }
 0x843   :  { %v2459_v50 = vadd.f32 %v2351_v46, %v2226_v29  ;;  %v2457_v5 = vpop.f32.mrb[10].mxu1 }
 0x844   :  { %2247 = vst.msk [vmem:[#allocation7 + $0x10] sm:$0xff] %vm64_vm0, %v2458_v48  ;;  %v2460_v0 = vadd.f32 %v2457_v5, %v2351_v46  ;;  %v2229_v31 = vpop.f32.mrb[11].mxu1 }
 0x845   :  { %2245 = vst.msk [vmem:[#allocation7] sm:$0xff] %vm64_vm0, %v2459_v50  ;;  %v2461_v22 = vadd.f32 %v2351_v46, %v2229_v31 }
 0x846   :  { %2248 = vst.msk [vmem:[#allocation7 + $0x18] sm:$0xff] %vm64_vm0, %v2460_v0 }
 0x847   :  { %2246 = vst.msk [vmem:[#allocation7 + $0x8] sm:$0xff] %vm64_vm0, %v2461_v22 }
 0x848   :  { %2556 = shalt.err (!%p2553_p3)
}
 0x849   :  { %s2557_s0 = scalar_lea.hbm %s3610_s6, 512 }
 0x84a   :  { %p2558_p4 = scmp.ne.s32.totalorder %s3610_s6, %s2557_s0  ;;  %p2561_p5 = scmp.lt.u32.totalorder %s2557_s0, %s3610_s6 }
 0x84c   :  { %p2563_p6 = pnand %p2561_p5, %p2558_p4 }
 0x84e   :  { %2566 = shalt.err (!%p2563_p6)
}
 0x84f   :  { %2260 = dma.vmem_to_hbm [thread:$0]  %s2255_s26, 512, %s3610_s6, [#allocation4], %s2574_s5, %s2574_s5, %s2575_s10  }
 0x850   :  { %2571 = dma.done.wait [#allocation4], 512  }
 0x851   :  { %2572 = vsyncadd [#allocation4], 4294966784 }
 0x852   :  { %2264 = vsyncpa [#allocation3], 1 }
 0x853   :  { %2265 = vsyncpa [#allocation4], 1 }
 0x854   :  { %2266 = vsyncpa [#allocation5], 1 }

</bundles_post_ra>
